<compile_context>
chip_gen: v6e
topology: v6e:2x2x1
jax: 0.10.0
libtpu: 0.0.40
codegen_flags: <defaults>
</compile_context>

<pallas_src>
import jax
import jax.numpy as jnp
from jax.experimental import pallas as pl
from jax.experimental.pallas import tpu as pltpu


def _make_apanet_kernel(scale_vector, H, W):
    """Builds the fused SPP + attention + sum-pool kernel body."""

    def kernel(x_ref, v_ref, out_ref):
        # x_ref  : (bt, C, H, W) float32 — raw NCHW feature maps, one batch tile
        # v_ref  : (1, C)        float32 — 1x1 conv ("attention") weight, C on lanes
        # out_ref: (bt, C)       float32 — sum-pooled attention-weighted features
        v = v_ref[...]                                       # (1, C)
        acc = jnp.zeros(out_ref.shape, jnp.float32)          # (bt, C)

        # Statically unrolled loop over the M = sum(s*s) pyramid regions.
        for s in scale_vector:
            hs, ws = H // s, W // s
            for i in range(s):
                for j in range(s):
                    # SPP region max-pool: (bt, C, hs, ws) -> (bt, C)
                    region = x_ref[:, :, i * hs:(i + 1) * hs, j * ws:(j + 1) * ws]
                    feat = jnp.max(jnp.max(region, axis=3), axis=2)           # (bt, C)
                    # F_nr over the size-1 trailing axis is just |feat|;
                    # the 1x1 conv C -> 1 is a lane (channel) reduction vs v.
                    # TODO(synk): for large C (>=256) this reduction could be
                    # routed through the MXU as a small matmul instead.
                    score = jnp.sum(jnp.abs(feat) * v, axis=1, keepdims=True)  # (bt, 1)
                    # F_1 = score * F_r, summed over regions (AvgPool divisor=1).
                    acc = acc + score * feat

        out_ref[...] = acc

    return kernel


def apanet_forward(x, scale_vector, v, *, batch_tile=8):
    """APANet forward (cascade=False path).

    x: (B, C, H, W) float32, v: (1, C, 1, 1) float32 -> (B, C, 1, 1) float32.
    """
    # TODO(synk): cascade=True branch not implemented — the reference assigns a
    # batch-shaped (B, C, 1, 1) tensor as a (1, C, 1, 1) conv weight, which is
    # ill-formed for general B; only the default cascade=False path is mapped.
    # TODO(synk): for very large C the channel dim should also be tiled in the
    # grid (two-pass score/weighting) to keep blocks under the v7x VMEM budget.
    B, C, H, W = x.shape
    scale_vector = tuple(int(s) for s in scale_vector)
    for s in scale_vector:
        if H % s or W % s:
            raise ValueError(f"H={H}, W={W} must be divisible by scale {s}")

    bt = min(int(batch_tile), B)
    grid_b = pl.cdiv(B, bt)

    x = x.astype(jnp.float32)
    v_lane = v.reshape(1, C).astype(jnp.float32)       # C on lanes, no padding

    out = pl.pallas_call(
        _make_apanet_kernel(scale_vector, H, W),
        out_shape=jax.ShapeDtypeStruct((B, C), jnp.float32),
        grid_spec=pltpu.PrefetchScalarGridSpec(
            num_scalar_prefetch=0,
            grid=(grid_b,),
            in_specs=[
                pl.BlockSpec((bt, C, H, W), lambda b: (b, 0, 0, 0)),
                pl.BlockSpec((1, C), lambda b: (0, 0)),
            ],
            out_specs=pl.BlockSpec((bt, C), lambda b: (b, 0)),
        ),
        compiler_params=pltpu.CompilerParams(
            dimension_semantics=("parallel",)),
    )(x, v_lane)

    # Restore the PyTorch (B, C, 1, 1) output shape (free metadata reshape).
    return out.reshape(B, C, 1, 1)


# --------------------------- Pure-JAX reference -------------------------------

def _reference(x, scale_vector, v):
    B, C, H, W = x.shape
    regions = []
    for s in scale_vector:
        pooled = x.reshape(B, C, s, H // s, s, W // s).max(axis=(3, 5))  # (B,C,s,s)
        regions.append(pooled.reshape(B, C, s * s))
    f_r = jnp.concatenate(regions, axis=2)                   # (B, C, M)
    f_nr = jnp.abs(f_r)                                      # norm over size-1 dim
    score = jnp.sum(v.reshape(1, C, 1) * f_nr, axis=1, keepdims=True)    # (B, 1, M)
    out = jnp.sum(score * f_r, axis=2)                       # (B, C)
    return out.reshape(B, C, 1, 1)


if __name__ == "__main__":
    key = jax.random.PRNGKey(0)
    kx, kv = jax.random.split(key)

    B, C, H, W = 2, 4, 16, 16
    scale_vector = (1, 2, 4)               # M = 1 + 4 + 16 = 21

    x = jax.random.normal(kx, (B, C, H, W), dtype=jnp.float32)
    # Deterministic stand-in for torch.rand((1, C, 1, 1)) conv weight.
    v = jax.random.uniform(kv, (1, C, 1, 1), dtype=jnp.float32)

    out = apanet_forward(x, scale_vector, v)
    out = jax.block_until_ready(out)

    ref = _reference(x, scale_vector, v)
    assert out.shape == (B, C, 1, 1), out.shape
    assert jnp.allclose(out, ref, rtol=1e-5, atol=1e-5), "mismatch vs reference"

    print("KERNEL_OK")
</pallas_src>

<mosaic_0001>
module attributes {stable_mosaic.version = 11 : i64} {
  func.func @kernel(%arg0: i32, %arg1: memref<2x4x16x16xf32, #tpu.memory_space<vmem>>, %arg2: memref<1x4xf32, #tpu.memory_space<vmem>>, %arg3: memref<2x4xf32, #tpu.memory_space<vmem>>) attributes {dimension_semantics = [#tpu.dimension_semantics<parallel>], iteration_bounds = array<i64: 1>, scalar_prefetch = 0 : i64, scratch_operands = 0 : i64, tpu.core_type = #tpu.core_type<tc>, window_params = [{transform_indices = @transform_0, window_bounds = array<i64: 2, 4, 16, 16>}, {pipeline_mode = #tpu.pipeline_mode<synchronous>, transform_indices = @transform_1, window_bounds = array<i64: 1, 4>}, {transform_indices = @transform_2, window_bounds = array<i64: 2, 4>}]} {
    %c0 = arith.constant 0 : index
    %c0_0 = arith.constant 0 : index
    %0 = vector.load %arg2[%c0, %c0_0] : memref<1x4xf32, #tpu.memory_space<vmem>>, vector<1x4xf32>
    %cst = arith.constant 0.000000e+00 : f32
    %1 = vector.broadcast %cst : f32 to vector<2x4xf32>
    %c0_1 = arith.constant 0 : index
    %c0_2 = arith.constant 0 : index
    %c0_3 = arith.constant 0 : index
    %c0_4 = arith.constant 0 : index
    %2 = vector.load %arg1[%c0_1, %c0_2, %c0_3, %c0_4] : memref<2x4x16x16xf32, #tpu.memory_space<vmem>>, vector<2x4x16x16xf32>
    %cst_5 = arith.constant dense<0xFF800000> : vector<2x4x16xf32>
    %3 = vector.multi_reduction <maximumf>, %2, %cst_5 [3] : vector<2x4x16x16xf32> to vector<2x4x16xf32>
    %cst_6 = arith.constant dense<0xFF800000> : vector<2x4xf32>
    %4 = vector.multi_reduction <maximumf>, %3, %cst_6 [2] : vector<2x4x16xf32> to vector<2x4xf32>
    %5 = math.absf %4 : vector<2x4xf32>
    %6 = vector.broadcast %0 : vector<1x4xf32> to vector<2x4xf32>
    %7 = arith.mulf %5, %6 : vector<2x4xf32>
    %cst_7 = arith.constant dense<0.000000e+00> : vector<2xf32>
    %8 = vector.multi_reduction <add>, %7, %cst_7 [1] : vector<2x4xf32> to vector<2xf32>
    %9 = vector.shape_cast %8 : vector<2xf32> to vector<2x1xf32>
    %10 = vector.broadcast %9 : vector<2x1xf32> to vector<2x4xf32>
    %11 = arith.mulf %10, %4 : vector<2x4xf32>
    %12 = arith.addf %1, %11 : vector<2x4xf32>
    %c0_8 = arith.constant 0 : index
    %c0_9 = arith.constant 0 : index
    %c0_10 = arith.constant 0 : index
    %c0_11 = arith.constant 0 : index
    %13 = vector.load %arg1[%c0_8, %c0_9, %c0_10, %c0_11] : memref<2x4x16x16xf32, #tpu.memory_space<vmem>>, vector<2x4x8x8xf32>
    %cst_12 = arith.constant dense<0xFF800000> : vector<2x4x8xf32>
    %14 = vector.multi_reduction <maximumf>, %13, %cst_12 [3] : vector<2x4x8x8xf32> to vector<2x4x8xf32>
    %cst_13 = arith.constant dense<0xFF800000> : vector<2x4xf32>
    %15 = vector.multi_reduction <maximumf>, %14, %cst_13 [2] : vector<2x4x8xf32> to vector<2x4xf32>
    %16 = math.absf %15 : vector<2x4xf32>
    %17 = vector.broadcast %0 : vector<1x4xf32> to vector<2x4xf32>
    %18 = arith.mulf %16, %17 : vector<2x4xf32>
    %cst_14 = arith.constant dense<0.000000e+00> : vector<2xf32>
    %19 = vector.multi_reduction <add>, %18, %cst_14 [1] : vector<2x4xf32> to vector<2xf32>
    %20 = vector.shape_cast %19 : vector<2xf32> to vector<2x1xf32>
    %21 = vector.broadcast %20 : vector<2x1xf32> to vector<2x4xf32>
    %22 = arith.mulf %21, %15 : vector<2x4xf32>
    %23 = arith.addf %12, %22 : vector<2x4xf32>
    %c0_15 = arith.constant 0 : index
    %c0_16 = arith.constant 0 : index
    %c0_17 = arith.constant 0 : index
    %c8 = arith.constant 8 : index
    %24 = vector.load %arg1[%c0_15, %c0_16, %c0_17, %c8] : memref<2x4x16x16xf32, #tpu.memory_space<vmem>>, vector<2x4x8x8xf32>
    %cst_18 = arith.constant dense<0xFF800000> : vector<2x4x8xf32>
    %25 = vector.multi_reduction <maximumf>, %24, %cst_18 [3] : vector<2x4x8x8xf32> to vector<2x4x8xf32>
    %cst_19 = arith.constant dense<0xFF800000> : vector<2x4xf32>
    %26 = vector.multi_reduction <maximumf>, %25, %cst_19 [2] : vector<2x4x8xf32> to vector<2x4xf32>
    %27 = math.absf %26 : vector<2x4xf32>
    %28 = vector.broadcast %0 : vector<1x4xf32> to vector<2x4xf32>
    %29 = arith.mulf %27, %28 : vector<2x4xf32>
    %cst_20 = arith.constant dense<0.000000e+00> : vector<2xf32>
    %30 = vector.multi_reduction <add>, %29, %cst_20 [1] : vector<2x4xf32> to vector<2xf32>
    %31 = vector.shape_cast %30 : vector<2xf32> to vector<2x1xf32>
    %32 = vector.broadcast %31 : vector<2x1xf32> to vector<2x4xf32>
    %33 = arith.mulf %32, %26 : vector<2x4xf32>
    %34 = arith.addf %23, %33 : vector<2x4xf32>
    %c0_21 = arith.constant 0 : index
    %c0_22 = arith.constant 0 : index
    %c8_23 = arith.constant 8 : index
    %c0_24 = arith.constant 0 : index
    %35 = vector.load %arg1[%c0_21, %c0_22, %c8_23, %c0_24] : memref<2x4x16x16xf32, #tpu.memory_space<vmem>>, vector<2x4x8x8xf32>
    %cst_25 = arith.constant dense<0xFF800000> : vector<2x4x8xf32>
    %36 = vector.multi_reduction <maximumf>, %35, %cst_25 [3] : vector<2x4x8x8xf32> to vector<2x4x8xf32>
    %cst_26 = arith.constant dense<0xFF800000> : vector<2x4xf32>
    %37 = vector.multi_reduction <maximumf>, %36, %cst_26 [2] : vector<2x4x8xf32> to vector<2x4xf32>
    %38 = math.absf %37 : vector<2x4xf32>
    %39 = vector.broadcast %0 : vector<1x4xf32> to vector<2x4xf32>
    %40 = arith.mulf %38, %39 : vector<2x4xf32>
    %cst_27 = arith.constant dense<0.000000e+00> : vector<2xf32>
    %41 = vector.multi_reduction <add>, %40, %cst_27 [1] : vector<2x4xf32> to vector<2xf32>
    %42 = vector.shape_cast %41 : vector<2xf32> to vector<2x1xf32>
    %43 = vector.broadcast %42 : vector<2x1xf32> to vector<2x4xf32>
    %44 = arith.mulf %43, %37 : vector<2x4xf32>
    %45 = arith.addf %34, %44 : vector<2x4xf32>
    %c0_28 = arith.constant 0 : index
    %c0_29 = arith.constant 0 : index
    %c8_30 = arith.constant 8 : index
    %c8_31 = arith.constant 8 : index
    %46 = vector.load %arg1[%c0_28, %c0_29, %c8_30, %c8_31] : memref<2x4x16x16xf32, #tpu.memory_space<vmem>>, vector<2x4x8x8xf32>
    %cst_32 = arith.constant dense<0xFF800000> : vector<2x4x8xf32>
    %47 = vector.multi_reduction <maximumf>, %46, %cst_32 [3] : vector<2x4x8x8xf32> to vector<2x4x8xf32>
    %cst_33 = arith.constant dense<0xFF800000> : vector<2x4xf32>
    %48 = vector.multi_reduction <maximumf>, %47, %cst_33 [2] : vector<2x4x8xf32> to vector<2x4xf32>
    %49 = math.absf %48 : vector<2x4xf32>
    %50 = vector.broadcast %0 : vector<1x4xf32> to vector<2x4xf32>
    %51 = arith.mulf %49, %50 : vector<2x4xf32>
    %cst_34 = arith.constant dense<0.000000e+00> : vector<2xf32>
    %52 = vector.multi_reduction <add>, %51, %cst_34 [1] : vector<2x4xf32> to vector<2xf32>
    %53 = vector.shape_cast %52 : vector<2xf32> to vector<2x1xf32>
    %54 = vector.broadcast %53 : vector<2x1xf32> to vector<2x4xf32>
    %55 = arith.mulf %54, %48 : vector<2x4xf32>
    %56 = arith.addf %45, %55 : vector<2x4xf32>
    %c0_35 = arith.constant 0 : index
    %c0_36 = arith.constant 0 : index
    %c0_37 = arith.constant 0 : index
    %c0_38 = arith.constant 0 : index
    %57 = vector.load %arg1[%c0_35, %c0_36, %c0_37, %c0_38] : memref<2x4x16x16xf32, #tpu.memory_space<vmem>>, vector<2x4x4x4xf32>
    %cst_39 = arith.constant dense<0xFF800000> : vector<2x4x4xf32>
    %58 = vector.multi_reduction <maximumf>, %57, %cst_39 [3] : vector<2x4x4x4xf32> to vector<2x4x4xf32>
    %cst_40 = arith.constant dense<0xFF800000> : vector<2x4xf32>
    %59 = vector.multi_reduction <maximumf>, %58, %cst_40 [2] : vector<2x4x4xf32> to vector<2x4xf32>
    %60 = math.absf %59 : vector<2x4xf32>
    %61 = vector.broadcast %0 : vector<1x4xf32> to vector<2x4xf32>
    %62 = arith.mulf %60, %61 : vector<2x4xf32>
    %cst_41 = arith.constant dense<0.000000e+00> : vector<2xf32>
    %63 = vector.multi_reduction <add>, %62, %cst_41 [1] : vector<2x4xf32> to vector<2xf32>
    %64 = vector.shape_cast %63 : vector<2xf32> to vector<2x1xf32>
    %65 = vector.broadcast %64 : vector<2x1xf32> to vector<2x4xf32>
    %66 = arith.mulf %65, %59 : vector<2x4xf32>
    %67 = arith.addf %56, %66 : vector<2x4xf32>
    %c0_42 = arith.constant 0 : index
    %c0_43 = arith.constant 0 : index
    %c0_44 = arith.constant 0 : index
    %c4 = arith.constant 4 : index
    %68 = vector.load %arg1[%c0_42, %c0_43, %c0_44, %c4] : memref<2x4x16x16xf32, #tpu.memory_space<vmem>>, vector<2x4x4x4xf32>
    %cst_45 = arith.constant dense<0xFF800000> : vector<2x4x4xf32>
    %69 = vector.multi_reduction <maximumf>, %68, %cst_45 [3] : vector<2x4x4x4xf32> to vector<2x4x4xf32>
    %cst_46 = arith.constant dense<0xFF800000> : vector<2x4xf32>
    %70 = vector.multi_reduction <maximumf>, %69, %cst_46 [2] : vector<2x4x4xf32> to vector<2x4xf32>
    %71 = math.absf %70 : vector<2x4xf32>
    %72 = vector.broadcast %0 : vector<1x4xf32> to vector<2x4xf32>
    %73 = arith.mulf %71, %72 : vector<2x4xf32>
    %cst_47 = arith.constant dense<0.000000e+00> : vector<2xf32>
    %74 = vector.multi_reduction <add>, %73, %cst_47 [1] : vector<2x4xf32> to vector<2xf32>
    %75 = vector.shape_cast %74 : vector<2xf32> to vector<2x1xf32>
    %76 = vector.broadcast %75 : vector<2x1xf32> to vector<2x4xf32>
    %77 = arith.mulf %76, %70 : vector<2x4xf32>
    %78 = arith.addf %67, %77 : vector<2x4xf32>
    %c0_48 = arith.constant 0 : index
    %c0_49 = arith.constant 0 : index
    %c0_50 = arith.constant 0 : index
    %c8_51 = arith.constant 8 : index
    %79 = vector.load %arg1[%c0_48, %c0_49, %c0_50, %c8_51] : memref<2x4x16x16xf32, #tpu.memory_space<vmem>>, vector<2x4x4x4xf32>
    %cst_52 = arith.constant dense<0xFF800000> : vector<2x4x4xf32>
    %80 = vector.multi_reduction <maximumf>, %79, %cst_52 [3] : vector<2x4x4x4xf32> to vector<2x4x4xf32>
    %cst_53 = arith.constant dense<0xFF800000> : vector<2x4xf32>
    %81 = vector.multi_reduction <maximumf>, %80, %cst_53 [2] : vector<2x4x4xf32> to vector<2x4xf32>
    %82 = math.absf %81 : vector<2x4xf32>
    %83 = vector.broadcast %0 : vector<1x4xf32> to vector<2x4xf32>
    %84 = arith.mulf %82, %83 : vector<2x4xf32>
    %cst_54 = arith.constant dense<0.000000e+00> : vector<2xf32>
    %85 = vector.multi_reduction <add>, %84, %cst_54 [1] : vector<2x4xf32> to vector<2xf32>
    %86 = vector.shape_cast %85 : vector<2xf32> to vector<2x1xf32>
    %87 = vector.broadcast %86 : vector<2x1xf32> to vector<2x4xf32>
    %88 = arith.mulf %87, %81 : vector<2x4xf32>
    %89 = arith.addf %78, %88 : vector<2x4xf32>
    %c0_55 = arith.constant 0 : index
    %c0_56 = arith.constant 0 : index
    %c0_57 = arith.constant 0 : index
    %c12 = arith.constant 12 : index
    %90 = vector.load %arg1[%c0_55, %c0_56, %c0_57, %c12] : memref<2x4x16x16xf32, #tpu.memory_space<vmem>>, vector<2x4x4x4xf32>
    %cst_58 = arith.constant dense<0xFF800000> : vector<2x4x4xf32>
    %91 = vector.multi_reduction <maximumf>, %90, %cst_58 [3] : vector<2x4x4x4xf32> to vector<2x4x4xf32>
    %cst_59 = arith.constant dense<0xFF800000> : vector<2x4xf32>
    %92 = vector.multi_reduction <maximumf>, %91, %cst_59 [2] : vector<2x4x4xf32> to vector<2x4xf32>
    %93 = math.absf %92 : vector<2x4xf32>
    %94 = vector.broadcast %0 : vector<1x4xf32> to vector<2x4xf32>
    %95 = arith.mulf %93, %94 : vector<2x4xf32>
    %cst_60 = arith.constant dense<0.000000e+00> : vector<2xf32>
    %96 = vector.multi_reduction <add>, %95, %cst_60 [1] : vector<2x4xf32> to vector<2xf32>
    %97 = vector.shape_cast %96 : vector<2xf32> to vector<2x1xf32>
    %98 = vector.broadcast %97 : vector<2x1xf32> to vector<2x4xf32>
    %99 = arith.mulf %98, %92 : vector<2x4xf32>
    %100 = arith.addf %89, %99 : vector<2x4xf32>
    %c0_61 = arith.constant 0 : index
    %c0_62 = arith.constant 0 : index
    %c4_63 = arith.constant 4 : index
    %c0_64 = arith.constant 0 : index
    %101 = vector.load %arg1[%c0_61, %c0_62, %c4_63, %c0_64] : memref<2x4x16x16xf32, #tpu.memory_space<vmem>>, vector<2x4x4x4xf32>
    %cst_65 = arith.constant dense<0xFF800000> : vector<2x4x4xf32>
    %102 = vector.multi_reduction <maximumf>, %101, %cst_65 [3] : vector<2x4x4x4xf32> to vector<2x4x4xf32>
    %cst_66 = arith.constant dense<0xFF800000> : vector<2x4xf32>
    %103 = vector.multi_reduction <maximumf>, %102, %cst_66 [2] : vector<2x4x4xf32> to vector<2x4xf32>
    %104 = math.absf %103 : vector<2x4xf32>
    %105 = vector.broadcast %0 : vector<1x4xf32> to vector<2x4xf32>
    %106 = arith.mulf %104, %105 : vector<2x4xf32>
    %cst_67 = arith.constant dense<0.000000e+00> : vector<2xf32>
    %107 = vector.multi_reduction <add>, %106, %cst_67 [1] : vector<2x4xf32> to vector<2xf32>
    %108 = vector.shape_cast %107 : vector<2xf32> to vector<2x1xf32>
    %109 = vector.broadcast %108 : vector<2x1xf32> to vector<2x4xf32>
    %110 = arith.mulf %109, %103 : vector<2x4xf32>
    %111 = arith.addf %100, %110 : vector<2x4xf32>
    %c0_68 = arith.constant 0 : index
    %c0_69 = arith.constant 0 : index
    %c4_70 = arith.constant 4 : index
    %c4_71 = arith.constant 4 : index
    %112 = vector.load %arg1[%c0_68, %c0_69, %c4_70, %c4_71] : memref<2x4x16x16xf32, #tpu.memory_space<vmem>>, vector<2x4x4x4xf32>
    %cst_72 = arith.constant dense<0xFF800000> : vector<2x4x4xf32>
    %113 = vector.multi_reduction <maximumf>, %112, %cst_72 [3] : vector<2x4x4x4xf32> to vector<2x4x4xf32>
    %cst_73 = arith.constant dense<0xFF800000> : vector<2x4xf32>
    %114 = vector.multi_reduction <maximumf>, %113, %cst_73 [2] : vector<2x4x4xf32> to vector<2x4xf32>
    %115 = math.absf %114 : vector<2x4xf32>
    %116 = vector.broadcast %0 : vector<1x4xf32> to vector<2x4xf32>
    %117 = arith.mulf %115, %116 : vector<2x4xf32>
    %cst_74 = arith.constant dense<0.000000e+00> : vector<2xf32>
    %118 = vector.multi_reduction <add>, %117, %cst_74 [1] : vector<2x4xf32> to vector<2xf32>
    %119 = vector.shape_cast %118 : vector<2xf32> to vector<2x1xf32>
    %120 = vector.broadcast %119 : vector<2x1xf32> to vector<2x4xf32>
    %121 = arith.mulf %120, %114 : vector<2x4xf32>
    %122 = arith.addf %111, %121 : vector<2x4xf32>
    %c0_75 = arith.constant 0 : index
    %c0_76 = arith.constant 0 : index
    %c4_77 = arith.constant 4 : index
    %c8_78 = arith.constant 8 : index
    %123 = vector.load %arg1[%c0_75, %c0_76, %c4_77, %c8_78] : memref<2x4x16x16xf32, #tpu.memory_space<vmem>>, vector<2x4x4x4xf32>
    %cst_79 = arith.constant dense<0xFF800000> : vector<2x4x4xf32>
    %124 = vector.multi_reduction <maximumf>, %123, %cst_79 [3] : vector<2x4x4x4xf32> to vector<2x4x4xf32>
    %cst_80 = arith.constant dense<0xFF800000> : vector<2x4xf32>
    %125 = vector.multi_reduction <maximumf>, %124, %cst_80 [2] : vector<2x4x4xf32> to vector<2x4xf32>
    %126 = math.absf %125 : vector<2x4xf32>
    %127 = vector.broadcast %0 : vector<1x4xf32> to vector<2x4xf32>
    %128 = arith.mulf %126, %127 : vector<2x4xf32>
    %cst_81 = arith.constant dense<0.000000e+00> : vector<2xf32>
    %129 = vector.multi_reduction <add>, %128, %cst_81 [1] : vector<2x4xf32> to vector<2xf32>
    %130 = vector.shape_cast %129 : vector<2xf32> to vector<2x1xf32>
    %131 = vector.broadcast %130 : vector<2x1xf32> to vector<2x4xf32>
    %132 = arith.mulf %131, %125 : vector<2x4xf32>
    %133 = arith.addf %122, %132 : vector<2x4xf32>
    %c0_82 = arith.constant 0 : index
    %c0_83 = arith.constant 0 : index
    %c4_84 = arith.constant 4 : index
    %c12_85 = arith.constant 12 : index
    %134 = vector.load %arg1[%c0_82, %c0_83, %c4_84, %c12_85] : memref<2x4x16x16xf32, #tpu.memory_space<vmem>>, vector<2x4x4x4xf32>
    %cst_86 = arith.constant dense<0xFF800000> : vector<2x4x4xf32>
    %135 = vector.multi_reduction <maximumf>, %134, %cst_86 [3] : vector<2x4x4x4xf32> to vector<2x4x4xf32>
    %cst_87 = arith.constant dense<0xFF800000> : vector<2x4xf32>
    %136 = vector.multi_reduction <maximumf>, %135, %cst_87 [2] : vector<2x4x4xf32> to vector<2x4xf32>
    %137 = math.absf %136 : vector<2x4xf32>
    %138 = vector.broadcast %0 : vector<1x4xf32> to vector<2x4xf32>
    %139 = arith.mulf %137, %138 : vector<2x4xf32>
    %cst_88 = arith.constant dense<0.000000e+00> : vector<2xf32>
    %140 = vector.multi_reduction <add>, %139, %cst_88 [1] : vector<2x4xf32> to vector<2xf32>
    %141 = vector.shape_cast %140 : vector<2xf32> to vector<2x1xf32>
    %142 = vector.broadcast %141 : vector<2x1xf32> to vector<2x4xf32>
    %143 = arith.mulf %142, %136 : vector<2x4xf32>
    %144 = arith.addf %133, %143 : vector<2x4xf32>
    %c0_89 = arith.constant 0 : index
    %c0_90 = arith.constant 0 : index
    %c8_91 = arith.constant 8 : index
    %c0_92 = arith.constant 0 : index
    %145 = vector.load %arg1[%c0_89, %c0_90, %c8_91, %c0_92] : memref<2x4x16x16xf32, #tpu.memory_space<vmem>>, vector<2x4x4x4xf32>
    %cst_93 = arith.constant dense<0xFF800000> : vector<2x4x4xf32>
    %146 = vector.multi_reduction <maximumf>, %145, %cst_93 [3] : vector<2x4x4x4xf32> to vector<2x4x4xf32>
    %cst_94 = arith.constant dense<0xFF800000> : vector<2x4xf32>
    %147 = vector.multi_reduction <maximumf>, %146, %cst_94 [2] : vector<2x4x4xf32> to vector<2x4xf32>
    %148 = math.absf %147 : vector<2x4xf32>
    %149 = vector.broadcast %0 : vector<1x4xf32> to vector<2x4xf32>
    %150 = arith.mulf %148, %149 : vector<2x4xf32>
    %cst_95 = arith.constant dense<0.000000e+00> : vector<2xf32>
    %151 = vector.multi_reduction <add>, %150, %cst_95 [1] : vector<2x4xf32> to vector<2xf32>
    %152 = vector.shape_cast %151 : vector<2xf32> to vector<2x1xf32>
    %153 = vector.broadcast %152 : vector<2x1xf32> to vector<2x4xf32>
    %154 = arith.mulf %153, %147 : vector<2x4xf32>
    %155 = arith.addf %144, %154 : vector<2x4xf32>
    %c0_96 = arith.constant 0 : index
    %c0_97 = arith.constant 0 : index
    %c8_98 = arith.constant 8 : index
    %c4_99 = arith.constant 4 : index
    %156 = vector.load %arg1[%c0_96, %c0_97, %c8_98, %c4_99] : memref<2x4x16x16xf32, #tpu.memory_space<vmem>>, vector<2x4x4x4xf32>
    %cst_100 = arith.constant dense<0xFF800000> : vector<2x4x4xf32>
    %157 = vector.multi_reduction <maximumf>, %156, %cst_100 [3] : vector<2x4x4x4xf32> to vector<2x4x4xf32>
    %cst_101 = arith.constant dense<0xFF800000> : vector<2x4xf32>
    %158 = vector.multi_reduction <maximumf>, %157, %cst_101 [2] : vector<2x4x4xf32> to vector<2x4xf32>
    %159 = math.absf %158 : vector<2x4xf32>
    %160 = vector.broadcast %0 : vector<1x4xf32> to vector<2x4xf32>
    %161 = arith.mulf %159, %160 : vector<2x4xf32>
    %cst_102 = arith.constant dense<0.000000e+00> : vector<2xf32>
    %162 = vector.multi_reduction <add>, %161, %cst_102 [1] : vector<2x4xf32> to vector<2xf32>
    %163 = vector.shape_cast %162 : vector<2xf32> to vector<2x1xf32>
    %164 = vector.broadcast %163 : vector<2x1xf32> to vector<2x4xf32>
    %165 = arith.mulf %164, %158 : vector<2x4xf32>
    %166 = arith.addf %155, %165 : vector<2x4xf32>
    %c0_103 = arith.constant 0 : index
    %c0_104 = arith.constant 0 : index
    %c8_105 = arith.constant 8 : index
    %c8_106 = arith.constant 8 : index
    %167 = vector.load %arg1[%c0_103, %c0_104, %c8_105, %c8_106] : memref<2x4x16x16xf32, #tpu.memory_space<vmem>>, vector<2x4x4x4xf32>
    %cst_107 = arith.constant dense<0xFF800000> : vector<2x4x4xf32>
    %168 = vector.multi_reduction <maximumf>, %167, %cst_107 [3] : vector<2x4x4x4xf32> to vector<2x4x4xf32>
    %cst_108 = arith.constant dense<0xFF800000> : vector<2x4xf32>
    %169 = vector.multi_reduction <maximumf>, %168, %cst_108 [2] : vector<2x4x4xf32> to vector<2x4xf32>
    %170 = math.absf %169 : vector<2x4xf32>
    %171 = vector.broadcast %0 : vector<1x4xf32> to vector<2x4xf32>
    %172 = arith.mulf %170, %171 : vector<2x4xf32>
    %cst_109 = arith.constant dense<0.000000e+00> : vector<2xf32>
    %173 = vector.multi_reduction <add>, %172, %cst_109 [1] : vector<2x4xf32> to vector<2xf32>
    %174 = vector.shape_cast %173 : vector<2xf32> to vector<2x1xf32>
    %175 = vector.broadcast %174 : vector<2x1xf32> to vector<2x4xf32>
    %176 = arith.mulf %175, %169 : vector<2x4xf32>
    %177 = arith.addf %166, %176 : vector<2x4xf32>
    %c0_110 = arith.constant 0 : index
    %c0_111 = arith.constant 0 : index
    %c8_112 = arith.constant 8 : index
    %c12_113 = arith.constant 12 : index
    %178 = vector.load %arg1[%c0_110, %c0_111, %c8_112, %c12_113] : memref<2x4x16x16xf32, #tpu.memory_space<vmem>>, vector<2x4x4x4xf32>
    %cst_114 = arith.constant dense<0xFF800000> : vector<2x4x4xf32>
    %179 = vector.multi_reduction <maximumf>, %178, %cst_114 [3] : vector<2x4x4x4xf32> to vector<2x4x4xf32>
    %cst_115 = arith.constant dense<0xFF800000> : vector<2x4xf32>
    %180 = vector.multi_reduction <maximumf>, %179, %cst_115 [2] : vector<2x4x4xf32> to vector<2x4xf32>
    %181 = math.absf %180 : vector<2x4xf32>
    %182 = vector.broadcast %0 : vector<1x4xf32> to vector<2x4xf32>
    %183 = arith.mulf %181, %182 : vector<2x4xf32>
    %cst_116 = arith.constant dense<0.000000e+00> : vector<2xf32>
    %184 = vector.multi_reduction <add>, %183, %cst_116 [1] : vector<2x4xf32> to vector<2xf32>
    %185 = vector.shape_cast %184 : vector<2xf32> to vector<2x1xf32>
    %186 = vector.broadcast %185 : vector<2x1xf32> to vector<2x4xf32>
    %187 = arith.mulf %186, %180 : vector<2x4xf32>
    %188 = arith.addf %177, %187 : vector<2x4xf32>
    %c0_117 = arith.constant 0 : index
    %c0_118 = arith.constant 0 : index
    %c12_119 = arith.constant 12 : index
    %c0_120 = arith.constant 0 : index
    %189 = vector.load %arg1[%c0_117, %c0_118, %c12_119, %c0_120] : memref<2x4x16x16xf32, #tpu.memory_space<vmem>>, vector<2x4x4x4xf32>
    %cst_121 = arith.constant dense<0xFF800000> : vector<2x4x4xf32>
    %190 = vector.multi_reduction <maximumf>, %189, %cst_121 [3] : vector<2x4x4x4xf32> to vector<2x4x4xf32>
    %cst_122 = arith.constant dense<0xFF800000> : vector<2x4xf32>
    %191 = vector.multi_reduction <maximumf>, %190, %cst_122 [2] : vector<2x4x4xf32> to vector<2x4xf32>
    %192 = math.absf %191 : vector<2x4xf32>
    %193 = vector.broadcast %0 : vector<1x4xf32> to vector<2x4xf32>
    %194 = arith.mulf %192, %193 : vector<2x4xf32>
    %cst_123 = arith.constant dense<0.000000e+00> : vector<2xf32>
    %195 = vector.multi_reduction <add>, %194, %cst_123 [1] : vector<2x4xf32> to vector<2xf32>
    %196 = vector.shape_cast %195 : vector<2xf32> to vector<2x1xf32>
    %197 = vector.broadcast %196 : vector<2x1xf32> to vector<2x4xf32>
    %198 = arith.mulf %197, %191 : vector<2x4xf32>
    %199 = arith.addf %188, %198 : vector<2x4xf32>
    %c0_124 = arith.constant 0 : index
    %c0_125 = arith.constant 0 : index
    %c12_126 = arith.constant 12 : index
    %c4_127 = arith.constant 4 : index
    %200 = vector.load %arg1[%c0_124, %c0_125, %c12_126, %c4_127] : memref<2x4x16x16xf32, #tpu.memory_space<vmem>>, vector<2x4x4x4xf32>
    %cst_128 = arith.constant dense<0xFF800000> : vector<2x4x4xf32>
    %201 = vector.multi_reduction <maximumf>, %200, %cst_128 [3] : vector<2x4x4x4xf32> to vector<2x4x4xf32>
    %cst_129 = arith.constant dense<0xFF800000> : vector<2x4xf32>
    %202 = vector.multi_reduction <maximumf>, %201, %cst_129 [2] : vector<2x4x4xf32> to vector<2x4xf32>
    %203 = math.absf %202 : vector<2x4xf32>
    %204 = vector.broadcast %0 : vector<1x4xf32> to vector<2x4xf32>
    %205 = arith.mulf %203, %204 : vector<2x4xf32>
    %cst_130 = arith.constant dense<0.000000e+00> : vector<2xf32>
    %206 = vector.multi_reduction <add>, %205, %cst_130 [1] : vector<2x4xf32> to vector<2xf32>
    %207 = vector.shape_cast %206 : vector<2xf32> to vector<2x1xf32>
    %208 = vector.broadcast %207 : vector<2x1xf32> to vector<2x4xf32>
    %209 = arith.mulf %208, %202 : vector<2x4xf32>
    %210 = arith.addf %199, %209 : vector<2x4xf32>
    %c0_131 = arith.constant 0 : index
    %c0_132 = arith.constant 0 : index
    %c12_133 = arith.constant 12 : index
    %c8_134 = arith.constant 8 : index
    %211 = vector.load %arg1[%c0_131, %c0_132, %c12_133, %c8_134] : memref<2x4x16x16xf32, #tpu.memory_space<vmem>>, vector<2x4x4x4xf32>
    %cst_135 = arith.constant dense<0xFF800000> : vector<2x4x4xf32>
    %212 = vector.multi_reduction <maximumf>, %211, %cst_135 [3] : vector<2x4x4x4xf32> to vector<2x4x4xf32>
    %cst_136 = arith.constant dense<0xFF800000> : vector<2x4xf32>
    %213 = vector.multi_reduction <maximumf>, %212, %cst_136 [2] : vector<2x4x4xf32> to vector<2x4xf32>
    %214 = math.absf %213 : vector<2x4xf32>
    %215 = vector.broadcast %0 : vector<1x4xf32> to vector<2x4xf32>
    %216 = arith.mulf %214, %215 : vector<2x4xf32>
    %cst_137 = arith.constant dense<0.000000e+00> : vector<2xf32>
    %217 = vector.multi_reduction <add>, %216, %cst_137 [1] : vector<2x4xf32> to vector<2xf32>
    %218 = vector.shape_cast %217 : vector<2xf32> to vector<2x1xf32>
    %219 = vector.broadcast %218 : vector<2x1xf32> to vector<2x4xf32>
    %220 = arith.mulf %219, %213 : vector<2x4xf32>
    %221 = arith.addf %210, %220 : vector<2x4xf32>
    %c0_138 = arith.constant 0 : index
    %c0_139 = arith.constant 0 : index
    %c12_140 = arith.constant 12 : index
    %c12_141 = arith.constant 12 : index
    %222 = vector.load %arg1[%c0_138, %c0_139, %c12_140, %c12_141] : memref<2x4x16x16xf32, #tpu.memory_space<vmem>>, vector<2x4x4x4xf32>
    %cst_142 = arith.constant dense<0xFF800000> : vector<2x4x4xf32>
    %223 = vector.multi_reduction <maximumf>, %222, %cst_142 [3] : vector<2x4x4x4xf32> to vector<2x4x4xf32>
    %cst_143 = arith.constant dense<0xFF800000> : vector<2x4xf32>
    %224 = vector.multi_reduction <maximumf>, %223, %cst_143 [2] : vector<2x4x4xf32> to vector<2x4xf32>
    %225 = math.absf %224 : vector<2x4xf32>
    %226 = vector.broadcast %0 : vector<1x4xf32> to vector<2x4xf32>
    %227 = arith.mulf %225, %226 : vector<2x4xf32>
    %cst_144 = arith.constant dense<0.000000e+00> : vector<2xf32>
    %228 = vector.multi_reduction <add>, %227, %cst_144 [1] : vector<2x4xf32> to vector<2xf32>
    %229 = vector.shape_cast %228 : vector<2xf32> to vector<2x1xf32>
    %230 = vector.broadcast %229 : vector<2x1xf32> to vector<2x4xf32>
    %231 = arith.mulf %230, %224 : vector<2x4xf32>
    %232 = arith.addf %221, %231 : vector<2x4xf32>
    %c0_145 = arith.constant 0 : index
    %c0_146 = arith.constant 0 : index
    %233 = vector.load %arg3[%c0_145, %c0_146] : memref<2x4xf32, #tpu.memory_space<vmem>>, vector<2x4xf32>
    tpu.vector_store %arg3[%c0_145, %c0_146], %232 {strides = array<i32>} : memref<2x4xf32, #tpu.memory_space<vmem>>, vector<2x4xf32>,
    return
  }
  func.func @transform_0(%arg0: i32) -> (i32, i32, i32, i32) {
    %c0_i32 = arith.constant 0 : i32
    %c0_i32_0 = arith.constant 0 : i32
    %c0_i32_1 = arith.constant 0 : i32
    %c0_i32_2 = arith.constant 0 : i32
    return %arg0, %c0_i32, %c0_i32_0, %c0_i32_1 : i32, i32, i32, i32
  }
  func.func @transform_1(%arg0: i32) -> (i32, i32) {
    %c0_i32 = arith.constant 0 : i32
    %c0_i32_0 = arith.constant 0 : i32
    %c0_i32_1 = arith.constant 0 : i32
    return %c0_i32, %c0_i32_0 : i32, i32
  }
  func.func @transform_2(%arg0: i32) -> (i32, i32) {
    %c0_i32 = arith.constant 0 : i32
    %c0_i32_0 = arith.constant 0 : i32
    return %arg0, %c0_i32 : i32, i32
  }
}

</mosaic_0001>

<bundles_post_ra>
// kernel: tpu_custom_call.1
= control target key start
LH: loop header
LB: loop body
LE: loop exit
PB: predicated region body
PF: predicated region fallthrough
CT: control target
= control target key end

     0   :  { %7 = vsyncpa [#allocation3], 0  ;;  %s3877_s0 = inlined_call_operand.hbm [shape: f32[2,4,16,16], index: 0, kind: input, shape index: {}]   ;;  %s3878_s1 = inlined_call_operand.vmem [shape: f32[1,4], index: 1, kind: input, shape index: {}]   ;;  %s3879_s2 = inlined_call_operand.hbm [shape: f32[2,4], index: 2, kind: output, shape index: {}]  }
   0x1   :  { %8 = vsyncpa [#allocation4], 0  ;;  %s2705_s9 = smov [#allocation2]  }
   0x2   :  { %s14_s10 = sshll.u32 %s2705_s9, 4  ;;  %s15_s10 = int_to_ptr.vmem [resolvable:$true] %s14_s10 }
   0x3   :  { %s2669_s11 = scalar_lea.vmem %s15_s10, 2048  ;;  %p2674_p1 = scmp.lt.s32.totalorder %s15_s10, %s15_s10 }
   0x4   :  { %p2670_p0 = scmp.ne.s32.totalorder %s15_s10, %s2669_s11  ;;  %p2675_p2 = scmp.lt.s32.totalorder %s2669_s11, %s2669_s11 }
   0x6   :  { %p2676_p3 = por %p2675_p2, %p2674_p1 }
   0x8   :  { %p2677_p4 = pnand %p2676_p3, %p2670_p0 }
   0xa   :  { %2680 = shalt.err (!%p2677_p4)
}
   0xb   :  { %s2706_s12 = smov 128   ;;  %s2707_s13 = smov 8  }
   0xc   :  { %20 = dma.hbm_to_vmem [thread:$0]  %s3877_s0, 2048, %s15_s10, [#allocation3], %s2706_s12, %s2706_s12, %s2707_s13  }
   0xd   :  { %2701 = dma.done.wait [#allocation3], 2048  }
   0xe   :  { %2702 = vsyncadd [#allocation3], 4294965248  ;;  %vm43_vm0 = vcmask 130048   ;;  %v2728_v0 = vld [vmem:[#allocation2 + $0x10] sm:$0xff]  ;;  %v2730_v1 = vld [vmem:[#allocation2] sm:$0xff]  ;;  %vm259_vm1 = vcmask 64512   ;;  %v108_v55 = vlaneseq }
   0xf   :  { %v2732_v2 = vld [vmem:[#allocation2 + $0x18] sm:$0xff]  ;;  %v50_v3 = vsel %vm43_vm0, %v2728_v0, -inf  ;;  %v44_v4 = vsel %vm43_vm0, %v2730_v1, -inf  ;;  %v2738_v5 = vld [vmem:[#allocation2 + $0x8] sm:$0xff]  ;;  %v2746_v9 = vld [vmem:[#allocation2 + $0x20] sm:$0xff]  ;;  %vm119_vm2 = vcmask 130112  }
  0x10   :  { %51 = vmax.xlane.f32.xlu1 %v50_v3  ;;  %45 = vmax.xlane.f32.xlu0 %v44_v4  ;;  %v53_v6 = vsel %vm43_vm0, %v2732_v2, -inf  ;;  %v47_v7 = vsel %vm43_vm0, %v2738_v5, -inf  ;;  %v2744_v8 = vld [vmem:[#allocation2 + $0x28] sm:$0xff]  ;;  %v56_v11 = vsel %vm43_vm0, %v2746_v9, -inf  ;;  %v2752_v12 = vld [vmem:[#allocation2 + $0x38] sm:$0xff]  ;;  %v33_v13 = vld [vmem:[#allocation2 + $0x30] sm:$0xff] }
  0x11   :  { %v59_v10 = vsel %vm43_vm0, %v2744_v8, -inf  ;;  %v65_v14 = vsel %vm43_vm0, %v2752_v12, -inf  ;;  %v62_v15 = vsel %vm43_vm0, %v33_v13, -inf  ;;  %v2757_v16 = vld [vmem:[#allocation2 + $0x48] sm:$0xff]  ;;  %v35_v17 = vld [vmem:[#allocation2 + $0x40] sm:$0xff]  ;;  %v2762_v20 = vld [vmem:[#allocation2 + $0x58] sm:$0xff] }
  0x12   :  { %v71_v18 = vsel %vm43_vm0, %v2757_v16, -inf  ;;  %v68_v19 = vsel %vm43_vm0, %v35_v17, -inf  ;;  %v37_v21 = vld [vmem:[#allocation2 + $0x50] sm:$0xff]  ;;  %v77_v22 = vsel %vm43_vm0, %v2762_v20, -inf  ;;  %v2767_v24 = vld [vmem:[#allocation2 + $0x68] sm:$0xff]  ;;  %v39_v25 = vld [vmem:[#allocation2 + $0x60] sm:$0xff] }
  0x13   :  { %v74_v23 = vsel %vm43_vm0, %v37_v21, -inf  ;;  %v83_v26 = vsel %vm43_vm0, %v2767_v24, -inf  ;;  %v80_v27 = vsel %vm43_vm0, %v39_v25, -inf  ;;  %v2772_v28 = vld [vmem:[#allocation2 + $0x78] sm:$0xff]  ;;  %v41_v29 = vld [vmem:[#allocation2 + $0x70] sm:$0xff]  ;;  %v269_v32 = vsel %vm259_vm1, %v33_v13, -inf }
  0x14   :  { %54 = vmax.xlane.f32.xlu1 %v53_v6  ;;  %48 = vmax.xlane.f32.xlu0 %v47_v7  ;;  %v89_v30 = vsel %vm43_vm0, %v2772_v28, -inf  ;;  %v86_v31 = vsel %vm43_vm0, %v41_v29, -inf  ;;  %v275_v33 = vsel %vm259_vm1, %v37_v21, -inf  ;;  %v281_v34 = vsel %vm259_vm1, %v41_v29, -inf  ;;  %v2653_v37 = vld [vmem:[%s3878_s1] ss:$0 sm:$0xff] }
  0x15   :  { %v381_v35 = vsel %vm119_vm2, %v2728_v0, -inf  ;;  %v384_v36 = vsel %vm119_vm2, %v2746_v9, -inf  ;;  %v387_v38 = vsel %vm119_vm2, %v33_v13, -inf  ;;  %v390_v39 = vsel %vm119_vm2, %v35_v17, -inf  ;;  %s2709_s1 = smov [#allocation5]  }
  0x16   :  { %v393_v40 = vsel %vm119_vm2, %v37_v21, -inf  ;;  %v396_v41 = vsel %vm119_vm2, %v39_v25, -inf  ;;  %v260_v42 = vsel %vm259_vm1, %v2730_v1, -inf  ;;  %v263_v43 = vsel %vm259_vm1, %v2728_v0, -inf  ;;  %s2644_s17 = sshll.u32 %s2709_s1, 4  ;;  %s2645_s17 = int_to_ptr.vmem [resolvable:$true] %s2644_s17 }
  0x17   :  { %v266_v44 = vsel %vm259_vm1, %v2746_v9, -inf  ;;  %v272_v45 = vsel %vm259_vm1, %v35_v17, -inf  ;;  %v278_v46 = vsel %vm259_vm1, %v39_v25, -inf  ;;  %v378_v47 = vsel %vm119_vm2, %v2730_v1, -inf  ;;  %s2681_s18 = scalar_lea.vmem %s2645_s17, 32  ;;  %p2686_p6 = scmp.lt.s32.totalorder %s2645_s17, %s2645_s17 }
  0x18   :  { %60 = vmax.xlane.f32.xlu1 %v59_v10  ;;  %57 = vmax.xlane.f32.xlu0 %v56_v11  ;;  %v399_v48 = vsel %vm119_vm2, %v41_v29, -inf  ;;  %v109_v58 = vand.u32 127, %v108_v55  ;;  %v111_v61 = vshrl.u32 %v108_v55, 7  ;;  %vm184_vm3 = vcmask 1041409   ;;  %p2682_p5 = scmp.ne.s32.totalorder %s2645_s17, %s2681_s18  ;;  %p2687_p7 = scmp.lt.s32.totalorder %s2681_s18, %s2681_s18 }
  0x19   :  { %vm186_vm4 = vcmask 1042434   ;;  %vm188_vm5 = vcmask 1043459   ;;  %vm195_vm6 = vcmask 125952   ;;  %vm332_vm7 = vcmask 60416  }
  0x1a   :  { %v114_v62 = vadd.s32 4294967288, %v109_v58  ;;  %v2818_v1 = vsub.s32 %v109_v58, %v111_v61  ;;  %vm737_vm8 = vcmask 27648   ;;  %vm855_vm9 = vcmask 60448   ;;  %p2688_p8 = por %p2687_p7, %p2686_p6 }
  0x1b   :  { %vm233_vm10 = vcmask 25600   ;;  %vm973_vm11 = vcmask 93248   ;;  %vm1091_vm12 = vcmask 126048  }
  0x1c   :  { %66 = vmax.xlane.f32.xlu1 %v65_v14  ;;  %63 = vmax.xlane.f32.xlu0 %v62_v15  ;;  %v2820_v3 = vsub.s32 %v114_v62, %v111_v61  ;;  %p2689_p9 = pnand %p2688_p8, %p2682_p5 }
  0x20   :  { %72 = vmax.xlane.f32.xlu1 %v71_v18  ;;  %69 = vmax.xlane.f32.xlu0 %v68_v19 }
  0x24   :  { %78 = vmax.xlane.f32.xlu1 %v77_v22  ;;  %75 = vmax.xlane.f32.xlu0 %v74_v23 }
  0x28   :  { %84 = vmax.xlane.f32.xlu1 %v83_v26  ;;  %81 = vmax.xlane.f32.xlu0 %v80_v27 }
  0x2c   :  { %90 = vmax.xlane.f32.xlu1 %v89_v30  ;;  %87 = vmax.xlane.f32.xlu0 %v86_v31 }
  0x30   :  { %270 = vmax.xlane.f32.xlu1 %v269_v32 }
  0x34   :  { %276 = vmax.xlane.f32.xlu1 %v275_v33 }
  0x38   :  { %282 = vmax.xlane.f32.xlu1 %v281_v34 }
  0x3c   :  { %382 = vmax.xlane.f32.xlu1 %v381_v35 }
  0x40   :  { %385 = vmax.xlane.f32.xlu1 %v384_v36 }
  0x42   :  { %210 = vbcast.lane.b32.xlu0 %v2653_v37, 256 }
  0x44   :  { %388 = vmax.xlane.f32.xlu1 %v387_v38 }
  0x48   :  { %391 = vmax.xlane.f32.xlu1 %v390_v39 }
  0x4c   :  { %394 = vmax.xlane.f32.xlu1 %v393_v40 }
  0x50   :  { %397 = vmax.xlane.f32.xlu1 %v396_v41 }
  0x61   :  { %261 = vmax.xlane.f32.xlu0 %v260_v42 }
  0x65   :  { %264 = vmax.xlane.f32.xlu0 %v263_v43 }
  0x69   :  { %267 = vmax.xlane.f32.xlu0 %v266_v44 }
  0x6d   :  { %273 = vmax.xlane.f32.xlu0 %v272_v45 }
  0x71   :  { %279 = vmax.xlane.f32.xlu0 %v278_v46 }
  0x75   :  { %379 = vmax.xlane.f32.xlu0 %v378_v47 }
  0x79   :  { %400 = vmax.xlane.f32.xlu0 %v399_v48 }
  0x99   :  { %v2802_v49 = vpop.xlane.xlu1 %51  ;;  %v2804_v50 = vpop.xlane.xlu0 %45 }
  0x9d   :  { %v2806_v51 = vpop.xlane.xlu1 %54  ;;  %v2808_v52 = vpop.xlane.xlu0 %48 }
  0xa1   :  { %v2810_v53 = vpop.xlane.xlu1 %60  ;;  %v2812_v54 = vpop.xlane.xlu0 %57 }
  0xa5   :  { %v2814_v56 = vpop.xlane.xlu1 %66  ;;  %v2816_v57 = vpop.xlane.xlu0 %63 }
  0xa9   :  { %v73_v59 = vpop.xlane.xlu1 %72  ;;  %v70_v60 = vpop.xlane.xlu0 %69 }
  0xaa   :  { %v155_v10 = vrot.slane %v73_v59, %v2820_v3  ;;  %v151_v11 = vrot.slane %v70_v60, %v2818_v1 }
  0xac   :  { %v156_v21 = vsel %vm119_vm2, %v155_v10, %v151_v11 }
  0xad   :  { %v79_v63 = vpop.xlane.xlu1 %78  ;;  %v76_v0 = vpop.xlane.xlu0 %75 }
  0xae   :  { %v164_v4 = vrot.slane %v79_v63, %v2820_v3  ;;  %v160_v6 = vrot.slane %v76_v0, %v2818_v1  ;;  %v124_v0 = vrot.slane %v2802_v49, %v2818_v1  ;;  %v118_v49 = vrot.slane %v2808_v52, %v2820_v3 }
  0xaf   :  { %v142_v52 = vrot.slane %v2816_v57, %v2818_v1 }
  0xb0   :  { %v165_v15 = vsel %vm119_vm2, %v164_v4, %v160_v6 }
  0xb1   :  { %v85_v7 = vpop.xlane.xlu1 %84  ;;  %v82_v9 = vpop.xlane.xlu0 %81  ;;  %v190_v25 = vsel %vm184_vm3, %v165_v15, %v156_v21  ;;  %v137_v15 = vrot.slane %v2810_v53, %v2820_v3 }
  0xb2   :  { %v173_v13 = vrot.slane %v85_v7, %v2820_v3  ;;  %v169_v14 = vrot.slane %v82_v9, %v2818_v1  ;;  %v113_v7 = vrot.slane %v2804_v50, %v2818_v1  ;;  %v133_v50 = vrot.slane %v2812_v54, %v2818_v1 }
  0xb4   :  { %v174_v19 = vsel %vm119_vm2, %v173_v13, %v169_v14  ;;  %v128_v14 = vrot.slane %v2806_v51, %v2820_v3  ;;  %v146_v51 = vrot.slane %v2814_v56, %v2820_v3 }
  0xb5   :  { %v91_v17 = vpop.xlane.xlu1 %90  ;;  %v88_v18 = vpop.xlane.xlu0 %87  ;;  %v191_v27 = vsel %vm186_vm4, %v174_v19, %v190_v25 }
  0xb6   :  { %v182_v22 = vrot.slane %v91_v17, %v2820_v3  ;;  %v178_v23 = vrot.slane %v88_v18, %v2818_v1 }
  0xb8   :  { %v183_v26 = vsel %vm119_vm2, %v182_v22, %v178_v23 }
  0xb9   :  { %v192_v29 = vsel %vm188_vm5, %v183_v26, %v191_v27  ;;  %v271_v31 = vpop.xlane.xlu1 %270  ;;  %v2840_v36 = vpop.permute.xlu0 %210  ;;  %v129_v27 = vsel %vm119_vm2, %v128_v14, %v124_v0 }
  0xba   :  { %v2838_v30 = vsel %vm195_vm6, %v192_v29, -inf  ;;  %v307_v45 = vrot.slane %v271_v31, %v2818_v1  ;;  %v120_v29 = vsel %vm119_vm2, %v118_v49, %v113_v7 }
  0xbd   :  { %v277_v32 = vpop.xlane.xlu1 %276 }
  0xbe   :  { %v315_v61 = vrot.slane %v277_v32, %v2818_v1  ;;  %v138_v32 = vsel %vm119_vm2, %v137_v15, %v133_v50 }
  0xc1   :  { %v283_v33 = vpop.xlane.xlu1 %282 }
  0xc2   :  { %v323_v4 = vrot.slane %v283_v33, %v2818_v1 }
  0xc5   :  { %v383_v34 = vpop.xlane.xlu1 %382 }
  0xc6   :  { %v417_v19 = vrot.slane %v383_v34, %v2818_v1 }
  0xc9   :  { %v386_v35 = vpop.xlane.xlu1 %385 }
  0xca   :  { %v421_v53 = vrot.slane %v386_v35, %v2818_v1  ;;  %v147_v35 = vsel %vm119_vm2, %v146_v51, %v142_v52  ;;  %v612_v51 = vsel %vm119_vm2, %v2738_v5, -inf }
  0xcd   :  { %v389_v38 = vpop.xlane.xlu1 %388 }
  0xce   :  { %v425_v25 = vrot.slane %v389_v38, %v2818_v1  ;;  %v185_v38 = vsel %vm184_vm3, %v129_v27, %v120_v29 }
  0xd1   :  { %v392_v41 = vpop.xlane.xlu1 %391 }
  0xd2   :  { %v429_v9 = vrot.slane %v392_v41, %v2818_v1  ;;  %v498_v41 = vsel %vm259_vm1, %v2732_v2, -inf }
  0xd5   :  { %v395_v58 = vpop.xlane.xlu1 %394 }
  0xd6   :  { %v433_v10 = vrot.slane %v395_v58, %v2818_v1  ;;  %v513_v58 = vsel %vm259_vm1, %v2767_v24, -inf }
  0xd8   :  { %v445_v26 = vsel %vm184_vm3, %v433_v10, %v429_v9 }
  0xd9   :  { %v398_v11 = vpop.xlane.xlu1 %397 }
  0xda   :  { %v437_v23 = vrot.slane %v398_v11, %v2818_v1 }
  0xdc   :  { %v446_v34 = vsel %vm186_vm4, %v437_v23, %v445_v26 }
  0xea   :  { %v262_v37 = vpop.xlane.xlu0 %261 }
  0xeb   :  { %v295_v42 = vrot.slane %v262_v37, %v2818_v1 }
  0xee   :  { %v265_v39 = vpop.xlane.xlu0 %264 }
  0xef   :  { %v299_v40 = vrot.slane %v265_v39, %v2818_v1 }
  0xf1   :  { %v324_v46 = vsel %vm184_vm3, %v299_v40, %v295_v42  ;;  %v187_v40 = vsel %vm186_vm4, %v138_v32, %v185_v38 }
  0xf2   :  { %v268_v43 = vpop.xlane.xlu0 %267  ;;  %v189_v42 = vsel %vm188_vm5, %v147_v35, %v187_v40 }
  0xf3   :  { %v303_v44 = vrot.slane %v268_v43, %v2818_v1  ;;  %v196_v43 = vsel %vm195_vm6, %v189_v42, -inf  ;;  %v2967_v42 = vld [vmem:[#allocation2 + $0x10] sm:$0xf] }
  0xf5   :  { %v325_v47 = vsel %vm186_vm4, %v303_v44, %v324_v46  ;;  %v504_v44 = vsel %vm259_vm1, %v2752_v12, -inf  ;;  %v510_v46 = vsel %vm259_vm1, %v2762_v20, -inf }
  0xf6   :  { %v274_v48 = vpop.xlane.xlu0 %273  ;;  %v326_v55 = vsel %vm188_vm5, %v307_v45, %v325_v47  ;;  %v495_v45 = vsel %vm259_vm1, %v2738_v5, -inf  ;;  %v501_v47 = vsel %vm259_vm1, %v2744_v8, -inf  ;;  %v621_v5 = vsel %vm119_vm2, %v2752_v12, -inf }
  0xf7   :  { %v333_v59 = vsel %vm332_vm7, %v326_v55, -inf  ;;  %v311_v60 = vrot.slane %v274_v48, %v2818_v1  ;;  %v516_v48 = vsel %vm259_vm1, %v2772_v28, -inf  ;;  %v507_v55 = vsel %vm259_vm1, %v2757_v16, -inf }
  0xf8   :  { %334 = vmax.xlane.f32.xlu0 %v333_v59 }
  0xf9   :  { %v327_v6 = vsel %vm184_vm3, %v315_v61, %v311_v60 }
  0xfa   :  { %v280_v62 = vpop.xlane.xlu0 %279 }
  0xfb   :  { %v319_v63 = vrot.slane %v280_v62, %v2818_v1 }
  0xfd   :  { %v328_v13 = vsel %vm186_vm4, %v319_v63, %v327_v6 }
  0xfe   :  { %v380_v17 = vpop.xlane.xlu0 %379  ;;  %v329_v18 = vsel %vm188_vm5, %v323_v4, %v328_v13 }
  0xff   :  { %v413_v21 = vrot.slane %v380_v17, %v2818_v1  ;;  %v336_v22 = vsel %vm332_vm7, %v329_v18, -inf }
 0x100   :  { %337 = vmax.xlane.f32.xlu1 %v336_v22 }
 0x101   :  { %v442_v54 = vsel %vm184_vm3, %v417_v19, %v413_v21 }
 0x102   :  { %v401_v31 = vpop.xlane.xlu0 %400  ;;  %v443_v56 = vsel %vm186_vm4, %v421_v53, %v442_v54  ;;  %v615_v54 = vsel %vm119_vm2, %v2732_v2, -inf  ;;  %v624_v2 = vsel %vm119_vm2, %v2757_v16, -inf }
 0x103   :  { %v441_v57 = vrot.slane %v401_v31, %v2818_v1  ;;  %v444_v3 = vsel %vm188_vm5, %v425_v25, %v443_v56  ;;  %v618_v31 = vsel %vm119_vm2, %v2744_v8, -inf  ;;  %v627_v56 = vsel %vm119_vm2, %v2762_v20, -inf }
 0x104   :  { %v450_v33 = vsel %vm332_vm7, %v444_v3, -inf  ;;  %v633_v3 = vsel %vm119_vm2, %v2772_v28, -inf }
 0x105   :  { %451 = vmax.xlane.f32.xlu1 %v450_v33  ;;  %v447_v37 = vsel %vm188_vm5, %v441_v57, %v446_v34  ;;  %v630_v57 = vsel %vm119_vm2, %v2767_v24, -inf }
 0x106   :  { %v453_v39 = vsel %vm332_vm7, %v447_v37, -inf }
 0x107   :  { %454 = vmax.xlane.f32.xlu0 %v453_v39 }
 0x109   :  { %499 = vmax.xlane.f32.xlu1 %v498_v41 }
 0x10b   :  { %197 = vmax.xlane.f32.xlu0 %v196_v43 }
 0x10d   :  { %505 = vmax.xlane.f32.xlu1 %v504_v44 }
 0x10f   :  { %496 = vmax.xlane.f32.xlu0 %v495_v45 }
 0x111   :  { %511 = vmax.xlane.f32.xlu1 %v510_v46  ;;  %v741_v46 = vsel %vm737_vm8, %v2967_v42, -inf }
 0x113   :  { %502 = vmax.xlane.f32.xlu0 %v501_v47 }
 0x115   :  { %517 = vmax.xlane.f32.xlu1 %v516_v48 }
 0x117   :  { %508 = vmax.xlane.f32.xlu0 %v507_v55  ;;  %v2974_v55 = vld [vmem:[#allocation2 + $0x30] sm:$0xf] }
 0x11b   :  { %514 = vmax.xlane.f32.xlu0 %v513_v58 }
 0x181   :  { %v2916_v60 = vpop.xlane.xlu0 %334 }
 0x189   :  { %v2914_v59 = vpop.xlane.xlu1 %337 }
 0x18e   :  { %v2918_v61 = vpop.xlane.xlu1 %451 }
 0x190   :  { %v2920_v62 = vpop.xlane.xlu0 %454 }
 0x192   :  { %v500_v63 = vpop.xlane.xlu1 %499 }
 0x193   :  { %v534_v7 = vrot.slane %v500_v63, %v2818_v1 }
 0x194   :  { %v2922_v0 = vpop.xlane.xlu0 %197 }
 0x196   :  { %v506_v4 = vpop.xlane.xlu1 %505 }
 0x197   :  { %v542_v11 = vrot.slane %v506_v4, %v2818_v1 }
 0x198   :  { %v497_v6 = vpop.xlane.xlu0 %496 }
 0x199   :  { %v530_v9 = vrot.slane %v497_v6, %v2818_v1  ;;  %v747_v6 = vsel %vm737_vm8, %v2974_v55, -inf }
 0x19a   :  { %v512_v10 = vpop.xlane.xlu1 %511 }
 0x19b   :  { %v559_v49 = vsel %vm184_vm3, %v534_v7, %v530_v9  ;;  %v550_v21 = vrot.slane %v512_v10, %v2818_v1  ;;  %v2983_v10 = vld [vmem:[#allocation2 + $0x50] sm:$0xf] }
 0x19c   :  { %v503_v13 = vpop.xlane.xlu0 %502 }
 0x19d   :  { %v538_v14 = vrot.slane %v503_v13, %v2818_v1 }
 0x19e   :  { %v518_v19 = vpop.xlane.xlu1 %517 }
 0x19f   :  { %v560_v15 = vsel %vm186_vm4, %v538_v14, %v559_v49  ;;  %v558_v53 = vrot.slane %v518_v19, %v2818_v1  ;;  %v753_v14 = vsel %vm737_vm8, %v2983_v10, -inf  ;;  %v3000_v19 = vld [vmem:[#allocation2 + $0x40] sm:$0xf] }
 0x1a0   :  { %v509_v17 = vpop.xlane.xlu0 %508  ;;  %v561_v18 = vsel %vm188_vm5, %v542_v11, %v560_v15  ;;  %v2985_v11 = vld [vmem:[#allocation2] sm:$0xf]  ;;  %v2992_v15 = vld [vmem:[#allocation2 + $0x70] sm:$0xf] }
 0x1a1   :  { %v567_v50 = vsel %vm332_vm7, %v561_v18, -inf  ;;  %v546_v22 = vrot.slane %v509_v17, %v2818_v1  ;;  %v738_v49 = vsel %vm737_vm8, %v2985_v11, -inf  ;;  %v2994_v17 = vld [vmem:[#allocation2 + $0x20] sm:$0xf]  ;;  %v759_v18 = vsel %vm737_vm8, %v2992_v15, -inf }
 0x1a2   :  { %568 = vmax.xlane.f32.xlu0 %v567_v50  ;;  %v744_v50 = vsel %vm737_vm8, %v2994_v17, -inf }
 0x1a3   :  { %v562_v25 = vsel %vm184_vm3, %v550_v21, %v546_v22  ;;  %v750_v21 = vsel %vm737_vm8, %v3000_v19, -inf  ;;  %v3004_v22 = vld [vmem:[#allocation2 + $0x60] sm:$0xf] }
 0x1a4   :  { %v515_v52 = vpop.xlane.xlu0 %514 }
 0x1a5   :  { %v554_v23 = vrot.slane %v515_v52, %v2818_v1  ;;  %v2708_v52 = vmov 0  }
 0x1a6   :  { %613 = vmax.xlane.f32.xlu0 %v612_v51  ;;  %v756_v51 = vsel %vm737_vm8, %v3004_v22, -inf  ;;  %2660 = vset.pattern.permute.xlu1 %v2708_v52 }
 0x1a7   :  { %v563_v26 = vsel %vm186_vm4, %v554_v23, %v562_v25  ;;  %2659 = vset.pattern.permute.xlu0 %v2708_v52 }
 0x1a8   :  { %v564_v27 = vsel %vm188_vm5, %v558_v53, %v563_v26 }
 0x1a9   :  { %v570_v29 = vsel %vm332_vm7, %v564_v27, -inf }
 0x1aa   :  { %616 = vmax.xlane.f32.xlu0 %v615_v54  ;;  %571 = vmax.xlane.f32.xlu1 %v570_v29 }
 0x1ae   :  { %622 = vmax.xlane.f32.xlu0 %v621_v5  ;;  %619 = vmax.xlane.f32.xlu1 %v618_v31 }
 0x1b2   :  { %628 = vmax.xlane.f32.xlu0 %v627_v56  ;;  %625 = vmax.xlane.f32.xlu1 %v624_v2 }
 0x1b6   :  { %631 = vmax.xlane.f32.xlu1 %v630_v57  ;;  %634 = vmax.xlane.f32.xlu0 %v633_v3 }
 0x22b   :  { %v2956_v12 = vpop.xlane.xlu0 %568 }
 0x22f   :  { %v614_v8 = vpop.xlane.xlu0 %613 }
 0x230   :  { %v647_v16 = vrot.slane %v614_v8, %v2818_v1 }
 0x233   :  { %v2958_v32 = vpop.xlane.xlu1 %571  ;;  %v617_v33 = vpop.xlane.xlu0 %616 }
 0x234   :  { %v651_v20 = vrot.slane %v617_v33, %v2818_v1 }
 0x236   :  { %v676_v28 = vsel %vm184_vm3, %v651_v20, %v647_v16 }
 0x237   :  { %v620_v34 = vpop.xlane.xlu1 %619  ;;  %v623_v35 = vpop.xlane.xlu0 %622 }
 0x238   :  { %v655_v37 = vrot.slane %v620_v34, %v2818_v1  ;;  %v659_v24 = vrot.slane %v623_v35, %v2818_v1 }
 0x23a   :  { %v677_v38 = vsel %vm186_vm4, %v655_v37, %v676_v28 }
 0x23b   :  { %v626_v39 = vpop.xlane.xlu1 %625  ;;  %v629_v40 = vpop.xlane.xlu0 %628  ;;  %v678_v41 = vsel %vm188_vm5, %v659_v24, %v677_v38 }
 0x23c   :  { %v684_v43 = vsel %vm332_vm7, %v678_v41, -inf  ;;  %v663_v44 = vrot.slane %v626_v39, %v2818_v1  ;;  %v667_v45 = vrot.slane %v629_v40, %v2818_v1  ;;  %v339_v41 = vand.u32 2147483647, %v2916_v60 }
 0x23d   :  { %685 = vmax.xlane.f32.xlu1 %v684_v43  ;;  %v340_v43 = vand.u32 2147483647, %v2914_v59 }
 0x23e   :  { %v679_v4 = vsel %vm184_vm3, %v667_v45, %v663_v44  ;;  %v457_v44 = vand.u32 2147483647, %v2920_v62  ;;  %v341_v45 = vmul.f32 %v339_v41, %v2840_v36 }
 0x23f   :  { %v632_v47 = vpop.xlane.xlu1 %631  ;;  %v635_v48 = vpop.xlane.xlu0 %634 }
 0x240   :  { %v671_v58 = vrot.slane %v632_v47, %v2818_v1  ;;  %v675_v63 = vrot.slane %v635_v48, %v2818_v1  ;;  %v342_v47 = vmul.f32 %v340_v43, %v2840_v36  ;;  %v573_v48 = vand.u32 2147483647, %v2956_v12 }
 0x241   :  { %742 = vmax.xlane.f32.xlu1 %v741_v46  ;;  %v456_v46 = vand.u32 2147483647, %v2918_v61 }
 0x242   :  { %v680_v7 = vsel %vm186_vm4, %v671_v58, %v679_v4  ;;  %v459_v58 = vmul.f32 %v457_v44, %v2840_v36 }
 0x243   :  { %v681_v9 = vsel %vm188_vm5, %v675_v63, %v680_v7  ;;  %v574_v63 = vand.u32 2147483647, %v2958_v32  ;;  %v458_v4 = vmul.f32 %v456_v46, %v2840_v36  ;;  %v575_v7 = vmul.f32 %v573_v48, %v2840_v36 }
 0x244   :  { %v687_v13 = vsel %vm332_vm7, %v681_v9, -inf }
 0x245   :  { %748 = vmax.xlane.f32.xlu1 %v747_v6  ;;  %688 = vmax.xlane.f32.xlu0 %v687_v13  ;;  %v576_v13 = vmul.f32 %v574_v63, %v2840_v36 }
 0x249   :  { %754 = vmax.xlane.f32.xlu1 %v753_v14  ;;  %739 = vmax.xlane.f32.xlu0 %v738_v49 }
 0x24d   :  { %760 = vmax.xlane.f32.xlu1 %v759_v18  ;;  %745 = vmax.xlane.f32.xlu0 %v744_v50 }
 0x251   :  { %200 = vmax.xlane.f32.xlu1 %v2838_v30  ;;  %751 = vmax.xlane.f32.xlu0 %v750_v21 }
 0x255   :  { %757 = vmax.xlane.f32.xlu0 %v756_v51 }
 0x2c6   :  { %v3009_v53 = vpop.xlane.xlu1 %685 }
 0x2c7   :  { %v690_v9 = vand.u32 2147483647, %v3009_v53 }
 0x2c9   :  { %v692_v49 = vmul.f32 %v690_v9, %v2840_v36 }
 0x2ca   :  { %v743_v23 = vpop.xlane.xlu1 %742 }
 0x2cb   :  { %v777_v27 = vrot.slane %v743_v23, %v2818_v1 }
 0x2ce   :  { %v3011_v25 = vpop.xlane.xlu0 %688  ;;  %v749_v54 = vpop.xlane.xlu1 %748 }
 0x2cf   :  { %v785_v30 = vrot.slane %v749_v54, %v2818_v1  ;;  %v691_v6 = vand.u32 2147483647, %v3011_v25  ;;  %v202_v54 = vand.u32 2147483647, %v2922_v0 }
 0x2d1   :  { %v693_v14 = vmul.f32 %v691_v6, %v2840_v36 }
 0x2d2   :  { %v740_v26 = vpop.xlane.xlu0 %739  ;;  %v755_v31 = vpop.xlane.xlu1 %754 }
 0x2d3   :  { %v773_v29 = vrot.slane %v740_v26, %v2818_v1  ;;  %v793_v20 = vrot.slane %v755_v31, %v2818_v1  ;;  %v859_v31 = vsel %vm855_vm9, %v2967_v42, -inf }
 0x2d5   :  { %v802_v2 = vsel %vm184_vm3, %v777_v27, %v773_v29  ;;  %v213_v29 = vmul.f32 %v2840_v36, %v202_v54 }
 0x2d6   :  { %v746_v5 = vpop.xlane.xlu0 %745  ;;  %v761_v34 = vpop.xlane.xlu1 %760 }
 0x2d7   :  { %v781_v56 = vrot.slane %v746_v5, %v2818_v1  ;;  %v801_v35 = vrot.slane %v761_v34, %v2818_v1  ;;  %v856_v5 = vsel %vm855_vm9, %v2985_v11, -inf }
 0x2d9   :  { %v803_v57 = vsel %vm186_vm4, %v781_v56, %v802_v2  ;;  %v865_v2 = vsel %vm855_vm9, %v2974_v55, -inf }
 0x2da   :  { %v752_v3 = vpop.xlane.xlu0 %751  ;;  %v804_v8 = vsel %vm188_vm5, %v785_v30, %v803_v57  ;;  %v3049_v51 = vpop.xlane.xlu1 %200 }
 0x2db   :  { %v810_v33 = vsel %vm737_vm8, %v804_v8, -inf  ;;  %v789_v16 = vrot.slane %v752_v3, %v2818_v1  ;;  %v203_v27 = vand.u32 2147483647, %v3049_v51  ;;  %v871_v3 = vsel %vm855_vm9, %v2983_v10, -inf }
 0x2dc   :  { %811 = vmax.xlane.f32.xlu0 %v810_v33 }
 0x2dd   :  { %v805_v28 = vsel %vm184_vm3, %v793_v20, %v789_v16  ;;  %v214_v30 = vmul.f32 %v2840_v36, %v203_v27  ;;  %v877_v16 = vsel %vm855_vm9, %v2992_v15, -inf }
 0x2de   :  { %v758_v37 = vpop.xlane.xlu0 %757 }
 0x2df   :  { %v797_v24 = vrot.slane %v758_v37, %v2818_v1 }
 0x2e1   :  { %v806_v38 = vsel %vm186_vm4, %v797_v24, %v805_v28 }
 0x2e2   :  { %v807_v39 = vsel %vm188_vm5, %v801_v35, %v806_v38 }
 0x2e3   :  { %v813_v40 = vsel %vm737_vm8, %v807_v39, -inf }
 0x2e4   :  { %814 = vmax.xlane.f32.xlu1 %v813_v40 }
 0x2f2   :  { %346 = vperm.xlu0 %2659, %v341_v45  }
 0x2f5   :  { %349 = vperm.xlu1 %2660, %v342_v47  }
 0x2f6   :  { %466 = vperm.xlu0 %2659, %v459_v58  }
 0x2f9   :  { %463 = vperm.xlu1 %2660, %v458_v4  }
 0x2fa   :  { %580 = vperm.xlu0 %2659, %v575_v7  }
 0x2fd   :  { %583 = vperm.xlu1 %2660, %v576_v13  }
 0x2fe   :  { %700 = vperm.xlu0 %2659, %v693_v14  }
 0x301   :  { %697 = vperm.xlu1 %2660, %v692_v49  }
 0x365   :  { %v3045_v18 = vpop.xlane.xlu0 %811 }
 0x366   :  { %v816_v50 = vand.u32 2147483647, %v3045_v18 }
 0x368   :  { %v818_v21 = vmul.f32 %v816_v50, %v2840_v36 }
 0x36a   :  { %823 = vperm.xlu0 %2659, %v818_v21  }
 0x36d   :  { %v3051_v52 = vpop.xlane.xlu1 %814  ;;  %v347_v57 = vpop.permute.xlu0 %346 }
 0x36e   :  { %v817_v23 = vand.u32 2147483647, %v3051_v52  ;;  %v354_v34 = vrot.slane %v347_v57, %v2818_v1 }
 0x370   :  { %v819_v26 = vmul.f32 %v817_v23, %v2840_v36 }
 0x371   :  { %v350_v56 = vpop.permute.xlu1 %349  ;;  %v467_v33 = vpop.permute.xlu0 %466 }
 0x372   :  { %826 = vperm.xlu1 %2660, %v819_v26   ;;  %v358_v20 = vrot.slane %v350_v56, %v2818_v1  ;;  %v475_v38 = vrot.slane %v467_v33, %v2818_v1 }
 0x374   :  { %v359_v24 = vsel %vm184_vm3, %v358_v20, %v354_v34 }
 0x375   :  { %v464_v8 = vpop.permute.xlu1 %463  ;;  %v581_v28 = vpop.permute.xlu0 %580  ;;  %v361_v39 = vsel %vm233_vm10, %v359_v24, 0.0 }
 0x376   :  { %218 = vperm.xlu1 %2660, %v213_v29   ;;  %v471_v37 = vrot.slane %v464_v8, %v2818_v1  ;;  %v588_v44 = vrot.slane %v581_v28, %v2818_v1 }
 0x378   :  { %v476_v41 = vsel %vm184_vm3, %v475_v38, %v471_v37 }
 0x379   :  { %v584_v35 = vpop.permute.xlu1 %583  ;;  %v701_v45 = vpop.permute.xlu0 %700  ;;  %v478_v46 = vsel %vm233_vm10, %v476_v41, 0.0 }
 0x37a   :  { %221 = vperm.xlu1 %2660, %v214_v30   ;;  %v592_v40 = vrot.slane %v584_v35, %v2818_v1  ;;  %v709_v58 = vrot.slane %v701_v45, %v2818_v1  ;;  %v862_v30 = vsel %vm855_vm9, %v2994_v17, -inf }
 0x37c   :  { %v593_v48 = vsel %vm184_vm3, %v592_v40, %v588_v44 }
 0x37d   :  { %v698_v43 = vpop.permute.xlu1 %697  ;;  %v595_v63 = vsel %vm233_vm10, %v593_v48, 0.0 }
 0x37e   :  { %v705_v47 = vrot.slane %v698_v43, %v2818_v1 }
 0x380   :  { %v710_v4 = vsel %vm184_vm3, %v709_v58, %v705_v47 }
 0x381   :  { %v712_v6 = vsel %vm233_vm10, %v710_v4, 0.0 }
 0x389   :  { %857 = vmax.xlane.f32.xlu0 %v856_v5  ;;  %v868_v5 = vsel %vm855_vm9, %v3000_v19, -inf }
 0x38d   :  { %860 = vmax.xlane.f32.xlu0 %v859_v31  ;;  %v874_v31 = vsel %vm855_vm9, %v3004_v22, -inf }
 0x391   :  { %866 = vmax.xlane.f32.xlu0 %v865_v2 }
 0x395   :  { %872 = vmax.xlane.f32.xlu0 %v871_v3 }
 0x399   :  { %878 = vmax.xlane.f32.xlu0 %v877_v16 }
 0x39e   :  { %362 = vadd.xlane.f32.xlu1 %v361_v39 }
 0x3a2   :  { %479 = vadd.xlane.f32.xlu1 %v478_v46 }
 0x3a6   :  { %596 = vadd.xlane.f32.xlu1 %v595_v63 }
 0x3aa   :  { %713 = vadd.xlane.f32.xlu1 %v712_v6 }
 0x3e5   :  { %v824_v13 = vpop.permute.xlu0 %823 }
 0x3e6   :  { %v831_v23 = vrot.slane %v824_v13, %v2818_v1 }
 0x3ed   :  { %v827_v7 = vpop.permute.xlu1 %826 }
 0x3ee   :  { %v835_v49 = vrot.slane %v827_v7, %v2818_v1 }
 0x3f0   :  { %v836_v27 = vsel %vm184_vm3, %v835_v49, %v831_v23 }
 0x3f1   :  { %v219_v9 = vpop.permute.xlu1 %218  ;;  %v838_v29 = vsel %vm233_vm10, %v836_v27, 0.0  ;;  %v980_v27 = vsel %vm973_vm11, %v2994_v17, -inf }
 0x3f2   :  { %v226_v50 = vrot.slane %v219_v9, %v2818_v1 }
 0x3f5   :  { %v222_v14 = vpop.permute.xlu1 %221 }
 0x3f6   :  { %v230_v21 = vrot.slane %v222_v14, %v2818_v1 }
 0x3f8   :  { %v231_v54 = vsel %vm184_vm3, %v230_v21, %v226_v50 }
 0x3f9   :  { %v234_v26 = vsel %vm233_vm10, %v231_v54, 0.0 }
 0x3fa   :  { %235 = vadd.xlane.f32.xlu1 %v234_v26  ;;  %v974_v26 = vsel %vm973_vm11, %v2985_v11, -inf }
 0x3fe   :  { %839 = vadd.xlane.f32.xlu1 %v838_v29  ;;  %v986_v29 = vsel %vm973_vm11, %v3000_v19, -inf }
 0x402   :  { %863 = vmax.xlane.f32.xlu1 %v862_v30  ;;  %v992_v30 = vsel %vm973_vm11, %v3004_v22, -inf }
 0x406   :  { %869 = vmax.xlane.f32.xlu1 %v868_v5 }
 0x40a   :  { %875 = vmax.xlane.f32.xlu1 %v874_v31 }
 0x412   :  { %v858_v3 = vpop.xlane.xlu0 %857 }
 0x413   :  { %v891_v35 = vrot.slane %v858_v3, %v2818_v1 }
 0x416   :  { %v861_v33 = vpop.xlane.xlu0 %860 }
 0x417   :  { %v895_v37 = vrot.slane %v861_v33, %v2818_v1 }
 0x419   :  { %v920_v40 = vsel %vm184_vm3, %v895_v37, %v891_v35  ;;  %v977_v37 = vsel %vm973_vm11, %v2967_v42, -inf }
 0x41a   :  { %v867_v16 = vpop.xlane.xlu0 %866 }
 0x41b   :  { %v903_v38 = vrot.slane %v867_v16, %v2818_v1 }
 0x41e   :  { %v873_v24 = vpop.xlane.xlu0 %872 }
 0x41f   :  { %v911_v48 = vrot.slane %v873_v24, %v2818_v1  ;;  %v983_v24 = vsel %vm973_vm11, %v2974_v55, -inf }
 0x422   :  { %v879_v46 = vpop.xlane.xlu0 %878 }
 0x423   :  { %v919_v63 = vrot.slane %v879_v46, %v2818_v1 }
 0x427   :  { %v3099_v56 = vpop.xlane.xlu1 %362 }
 0x42b   :  { %v3101_v2 = vpop.xlane.xlu1 %479 }
 0x42f   :  { %v3103_v57 = vpop.xlane.xlu1 %596 }
 0x433   :  { %v3105_v8 = vpop.xlane.xlu1 %713 }
 0x483   :  { %v3107_v20 = vpop.xlane.xlu1 %235 }
 0x487   :  { %v3109_v34 = vpop.xlane.xlu1 %839 }
 0x48b   :  { %v864_v28 = vpop.xlane.xlu1 %863 }
 0x48c   :  { %v899_v39 = vrot.slane %v864_v28, %v2818_v1  ;;  %v989_v28 = vsel %vm973_vm11, %v2983_v10, -inf }
 0x48e   :  { %v921_v41 = vsel %vm186_vm4, %v899_v39, %v920_v40 }
 0x48f   :  { %v870_v43 = vpop.xlane.xlu1 %869  ;;  %v922_v44 = vsel %vm188_vm5, %v903_v38, %v921_v41  ;;  %v995_v38 = vsel %vm973_vm11, %v2992_v15, -inf }
 0x490   :  { %v928_v45 = vsel %vm737_vm8, %v922_v44, -inf  ;;  %v907_v47 = vrot.slane %v870_v43, %v2818_v1 }
 0x491   :  { %929 = vmax.xlane.f32.xlu1 %v928_v45 }
 0x492   :  { %v923_v6 = vsel %vm184_vm3, %v911_v48, %v907_v47 }
 0x493   :  { %v876_v58 = vpop.xlane.xlu1 %875 }
 0x494   :  { %v915_v4 = vrot.slane %v876_v58, %v2818_v1 }
 0x496   :  { %v924_v7 = vsel %vm186_vm4, %v915_v4, %v923_v6 }
 0x497   :  { %v925_v9 = vsel %vm188_vm5, %v919_v63, %v924_v7 }
 0x498   :  { %v931_v13 = vsel %vm737_vm8, %v925_v9, -inf }
 0x499   :  { %932 = vmax.xlane.f32.xlu0 %v931_v13 }
 0x51a   :  { %v3127_v14 = vpop.xlane.xlu1 %929 }
 0x51b   :  { %v934_v49 = vand.u32 2147483647, %v3127_v14 }
 0x51d   :  { %v936_v50 = vmul.f32 %v934_v49, %v2840_v36 }
 0x51f   :  { %941 = vperm.xlu1 %2660, %v936_v50  }
 0x522   :  { %v3131_v21 = vpop.xlane.xlu0 %932 }
 0x523   :  { %v935_v23 = vand.u32 2147483647, %v3131_v21 }
 0x525   :  { %v937_v54 = vmul.f32 %v935_v23, %v2840_v36 }
 0x527   :  { %944 = vperm.xlu0 %2659, %v937_v54  }
 0x546   :  { %975 = vmax.xlane.f32.xlu0 %v974_v26 }
 0x54a   :  { %981 = vmax.xlane.f32.xlu0 %v980_v27 }
 0x54e   :  { %987 = vmax.xlane.f32.xlu0 %v986_v29 }
 0x552   :  { %993 = vmax.xlane.f32.xlu0 %v992_v30 }
 0x59a   :  { %v942_v5 = vpop.permute.xlu1 %941 }
 0x59b   :  { %v949_v3 = vrot.slane %v942_v5, %v2818_v1 }
 0x5a2   :  { %v945_v31 = vpop.permute.xlu0 %944 }
 0x5a3   :  { %v953_v33 = vrot.slane %v945_v31, %v2818_v1 }
 0x5a5   :  { %v954_v16 = vsel %vm184_vm3, %v953_v33, %v949_v3 }
 0x5a6   :  { %v956_v35 = vsel %vm233_vm10, %v954_v16, 0.0 }
 0x5a7   :  { %957 = vadd.xlane.f32.xlu1 %v956_v35 }
 0x5ab   :  { %978 = vmax.xlane.f32.xlu1 %v977_v37 }
 0x5af   :  { %984 = vmax.xlane.f32.xlu1 %v983_v24  ;;  %v1092_v24 = vsel %vm1091_vm12, %v2985_v11, -inf }
 0x5b3   :  { %990 = vmax.xlane.f32.xlu1 %v989_v28  ;;  %v1095_v28 = vsel %vm1091_vm12, %v2967_v42, -inf }
 0x5b7   :  { %996 = vmax.xlane.f32.xlu1 %v995_v38  ;;  %v1101_v38 = vsel %vm1091_vm12, %v2974_v55, -inf  ;;  %v1098_v55 = vsel %vm1091_vm12, %v2994_v17, -inf }
 0x5cf   :  { %v976_v39 = vpop.xlane.xlu0 %975 }
 0x5d0   :  { %v1009_v43 = vrot.slane %v976_v39, %v2818_v1  ;;  %v1107_v39 = vsel %vm1091_vm12, %v2983_v10, -inf  ;;  %v1104_v10 = vsel %vm1091_vm12, %v3000_v19, -inf }
 0x5d3   :  { %v982_v40 = vpop.xlane.xlu0 %981 }
 0x5d4   :  { %v1017_v47 = vrot.slane %v982_v40, %v2818_v1  ;;  %v1113_v40 = vsel %vm1091_vm12, %v2992_v15, -inf  ;;  %v1110_v15 = vsel %vm1091_vm12, %v3004_v22, -inf }
 0x5d7   :  { %v988_v46 = vpop.xlane.xlu0 %987 }
 0x5d8   :  { %v1025_v6 = vrot.slane %v988_v46, %v2818_v1 }
 0x5db   :  { %v994_v9 = vpop.xlane.xlu0 %993 }
 0x5dc   :  { %v1033_v23 = vrot.slane %v994_v9, %v2818_v1 }
 0x630   :  { %v3155_v41 = vpop.xlane.xlu1 %957 }
 0x634   :  { %v979_v44 = vpop.xlane.xlu1 %978 }
 0x635   :  { %v1013_v45 = vrot.slane %v979_v44, %v2818_v1 }
 0x637   :  { %v1038_v48 = vsel %vm184_vm3, %v1013_v45, %v1009_v43 }
 0x638   :  { %v985_v58 = vpop.xlane.xlu1 %984  ;;  %v1039_v4 = vsel %vm186_vm4, %v1017_v47, %v1038_v48 }
 0x639   :  { %v1021_v63 = vrot.slane %v985_v58, %v2818_v1 }
 0x63b   :  { %v1040_v7 = vsel %vm188_vm5, %v1021_v63, %v1039_v4 }
 0x63c   :  { %v991_v13 = vpop.xlane.xlu1 %990  ;;  %v1046_v49 = vsel %vm737_vm8, %v1040_v7, -inf }
 0x63d   :  { %v1029_v50 = vrot.slane %v991_v13, %v2818_v1  ;;  %1047 = vmax.xlane.f32.xlu0 %v1046_v49 }
 0x63f   :  { %v1041_v54 = vsel %vm184_vm3, %v1029_v50, %v1025_v6 }
 0x640   :  { %v997_v26 = vpop.xlane.xlu1 %996  ;;  %v1042_v29 = vsel %vm186_vm4, %v1033_v23, %v1041_v54 }
 0x641   :  { %v1037_v27 = vrot.slane %v997_v26, %v2818_v1 }
 0x643   :  { %v1043_v30 = vsel %vm188_vm5, %v1037_v27, %v1042_v29 }
 0x644   :  { %v1049_v5 = vsel %vm737_vm8, %v1043_v30, -inf }
 0x645   :  { %1050 = vmax.xlane.f32.xlu1 %v1049_v5 }
 0x6c6   :  { %v3173_v31 = vpop.xlane.xlu0 %1047 }
 0x6c7   :  { %v1052_v3 = vand.u32 2147483647, %v3173_v31 }
 0x6c9   :  { %v1054_v33 = vmul.f32 %v1052_v3, %v2840_v36 }
 0x6cb   :  { %1059 = vperm.xlu0 %2659, %v1054_v33  }
 0x6ce   :  { %v3177_v16 = vpop.xlane.xlu1 %1050 }
 0x6cf   :  { %v1053_v35 = vand.u32 2147483647, %v3177_v16 }
 0x6d1   :  { %v1055_v37 = vmul.f32 %v1053_v35, %v2840_v36 }
 0x6d3   :  { %1062 = vperm.xlu1 %2660, %v1055_v37  }
 0x6ea   :  { %1093 = vmax.xlane.f32.xlu0 %v1092_v24 }
 0x6ee   :  { %1096 = vmax.xlane.f32.xlu0 %v1095_v28 }
 0x6f2   :  { %1102 = vmax.xlane.f32.xlu0 %v1101_v38 }
 0x6f6   :  { %1108 = vmax.xlane.f32.xlu0 %v1107_v39 }
 0x6fa   :  { %1114 = vmax.xlane.f32.xlu0 %v1113_v40 }
 0x746   :  { %v1060_v43 = vpop.permute.xlu0 %1059 }
 0x747   :  { %v1067_v11 = vrot.slane %v1060_v43, %v2818_v1 }
 0x74e   :  { %v1063_v44 = vpop.permute.xlu1 %1062 }
 0x74f   :  { %v1071_v45 = vrot.slane %v1063_v44, %v2818_v1  ;;  %v3227_v44 = vld [vmem:[#allocation2 + $0x4] sm:$0xf] }
 0x751   :  { %v1072_v42 = vsel %vm184_vm3, %v1071_v45, %v1067_v11  ;;  %v1217_v11 = vsel %vm737_vm8, %v3227_v44, -inf  ;;  %v3231_v45 = vld [vmem:[#allocation2 + $0x24] sm:$0xf] }
 0x752   :  { %v1074_v46 = vsel %vm233_vm10, %v1072_v42, 0.0  ;;  %v1223_v42 = vsel %vm737_vm8, %v3231_v45, -inf }
 0x753   :  { %1075 = vadd.xlane.f32.xlu1 %v1074_v46  ;;  %v3235_v46 = vld [vmem:[#allocation2 + $0x44] sm:$0xf] }
 0x757   :  { %1099 = vmax.xlane.f32.xlu1 %v1098_v55  ;;  %v1229_v55 = vsel %vm737_vm8, %v3235_v46, -inf }
 0x75b   :  { %1105 = vmax.xlane.f32.xlu1 %v1104_v10  ;;  %v3239_v10 = vld [vmem:[#allocation2 + $0x64] sm:$0xf] }
 0x75f   :  { %1111 = vmax.xlane.f32.xlu1 %v1110_v15  ;;  %v1235_v15 = vsel %vm737_vm8, %v3239_v10, -inf }
 0x773   :  { %v1094_v47 = vpop.xlane.xlu0 %1093 }
 0x774   :  { %v1127_v4 = vrot.slane %v1094_v47, %v2818_v1 }
 0x777   :  { %v1097_v48 = vpop.xlane.xlu0 %1096 }
 0x778   :  { %v1131_v6 = vrot.slane %v1097_v48, %v2818_v1 }
 0x77a   :  { %v1156_v13 = vsel %vm184_vm3, %v1131_v6, %v1127_v4 }
 0x77b   :  { %v1103_v58 = vpop.xlane.xlu0 %1102 }
 0x77c   :  { %v1139_v9 = vrot.slane %v1103_v58, %v2818_v1 }
 0x77f   :  { %v1109_v7 = vpop.xlane.xlu0 %1108 }
 0x780   :  { %v1147_v27 = vrot.slane %v1109_v7, %v2818_v1  ;;  %v3246_v7 = vld [vmem:[#allocation2 + $0x14] sm:$0xf] }
 0x783   :  { %v1115_v54 = vpop.xlane.xlu0 %1114 }
 0x784   :  { %v1155_v30 = vrot.slane %v1115_v54, %v2818_v1 }
 0x7dc   :  { %v3201_v63 = vpop.xlane.xlu1 %1075 }
 0x7e0   :  { %v1100_v17 = vpop.xlane.xlu1 %1099 }
 0x7e1   :  { %v1135_v19 = vrot.slane %v1100_v17, %v2818_v1 }
 0x7e3   :  { %v1157_v22 = vsel %vm186_vm4, %v1135_v19, %v1156_v13  ;;  %v3251_v19 = vld [vmem:[#allocation2 + $0x34] sm:$0xf] }
 0x7e4   :  { %v1106_v49 = vpop.xlane.xlu1 %1105  ;;  %v1158_v50 = vsel %vm188_vm5, %v1139_v9, %v1157_v22  ;;  %v1220_v9 = vsel %vm737_vm8, %v3246_v7, -inf  ;;  %v1226_v13 = vsel %vm737_vm8, %v3251_v19, -inf  ;;  %v3255_v22 = vld [vmem:[#allocation2 + $0x54] sm:$0xf] }
 0x7e5   :  { %v1164_v23 = vsel %vm737_vm8, %v1158_v50, -inf  ;;  %v1143_v26 = vrot.slane %v1106_v49, %v2818_v1  ;;  %v1232_v49 = vsel %vm737_vm8, %v3255_v22, -inf  ;;  %v3259_v50 = vld [vmem:[#allocation2 + $0x74] sm:$0xf] }
 0x7e6   :  { %1165 = vmax.xlane.f32.xlu1 %v1164_v23  ;;  %v1238_v23 = vsel %vm737_vm8, %v3259_v50, -inf }
 0x7e7   :  { %v1159_v3 = vsel %vm184_vm3, %v1147_v27, %v1143_v26 }
 0x7e8   :  { %v1112_v29 = vpop.xlane.xlu1 %1111 }
 0x7e9   :  { %v1151_v5 = vrot.slane %v1112_v29, %v2818_v1 }
 0x7eb   :  { %v1160_v33 = vsel %vm186_vm4, %v1151_v5, %v1159_v3 }
 0x7ec   :  { %v1161_v35 = vsel %vm188_vm5, %v1155_v30, %v1160_v33 }
 0x7ed   :  { %v1167_v37 = vsel %vm737_vm8, %v1161_v35, -inf }
 0x7ee   :  { %1168 = vmax.xlane.f32.xlu0 %v1167_v37 }
 0x86f   :  { %v3219_v24 = vpop.xlane.xlu1 %1165 }
 0x870   :  { %v1170_v28 = vand.u32 2147483647, %v3219_v24 }
 0x872   :  { %v1172_v38 = vmul.f32 %v1170_v28, %v2840_v36 }
 0x874   :  { %1177 = vperm.xlu1 %2660, %v1172_v38  }
 0x877   :  { %v3223_v39 = vpop.xlane.xlu0 %1168 }
 0x878   :  { %v1171_v40 = vand.u32 2147483647, %v3223_v39 }
 0x87a   :  { %v1173_v43 = vmul.f32 %v1171_v40, %v2840_v36 }
 0x87c   :  { %1180 = vperm.xlu0 %2659, %v1173_v43  }
 0x89b   :  { %1218 = vmax.xlane.f32.xlu0 %v1217_v11 }
 0x89f   :  { %1224 = vmax.xlane.f32.xlu0 %v1223_v42 }
 0x8a3   :  { %1230 = vmax.xlane.f32.xlu0 %v1229_v55 }
 0x8a7   :  { %1236 = vmax.xlane.f32.xlu0 %v1235_v15 }
 0x8ef   :  { %v1178_v47 = vpop.permute.xlu1 %1177 }
 0x8f0   :  { %v1185_v58 = vrot.slane %v1178_v47, %v2818_v1 }
 0x8f7   :  { %v1181_v48 = vpop.permute.xlu0 %1180 }
 0x8f8   :  { %v1189_v4 = vrot.slane %v1181_v48, %v2818_v1 }
 0x8fa   :  { %v1190_v6 = vsel %vm184_vm3, %v1189_v4, %v1185_v58 }
 0x8fb   :  { %v1192_v17 = vsel %vm233_vm10, %v1190_v6, 0.0 }
 0x8fc   :  { %1193 = vadd.xlane.f32.xlu1 %v1192_v17 }
 0x900   :  { %1221 = vmax.xlane.f32.xlu1 %v1220_v9 }
 0x904   :  { %1227 = vmax.xlane.f32.xlu1 %v1226_v13 }
 0x908   :  { %1233 = vmax.xlane.f32.xlu1 %v1232_v49 }
 0x90c   :  { %1239 = vmax.xlane.f32.xlu1 %v1238_v23 }
 0x924   :  { %v1219_v54 = vpop.xlane.xlu0 %1218 }
 0x925   :  { %v1252_v29 = vrot.slane %v1219_v54, %v2818_v1 }
 0x928   :  { %v1225_v26 = vpop.xlane.xlu0 %1224 }
 0x929   :  { %v1260_v33 = vrot.slane %v1225_v26, %v2818_v1 }
 0x92c   :  { %v1231_v3 = vpop.xlane.xlu0 %1230 }
 0x92d   :  { %v1268_v40 = vrot.slane %v1231_v3, %v2818_v1  ;;  %v1343_v3 = vsel %vm855_vm9, %v3251_v19, -inf }
 0x930   :  { %v1237_v11 = vpop.xlane.xlu0 %1236 }
 0x931   :  { %v1276_v47 = vrot.slane %v1237_v11, %v2818_v1 }
 0x985   :  { %v3263_v27 = vpop.xlane.xlu1 %1193 }
 0x989   :  { %v1222_v30 = vpop.xlane.xlu1 %1221 }
 0x98a   :  { %v1256_v5 = vrot.slane %v1222_v30, %v2818_v1  ;;  %v1334_v30 = vsel %vm855_vm9, %v3227_v44, -inf }
 0x98c   :  { %v1281_v35 = vsel %vm184_vm3, %v1256_v5, %v1252_v29  ;;  %v1337_v5 = vsel %vm855_vm9, %v3246_v7, -inf }
 0x98d   :  { %v1228_v37 = vpop.xlane.xlu1 %1227  ;;  %v1282_v38 = vsel %vm186_vm4, %v1260_v33, %v1281_v35  ;;  %v1349_v33 = vsel %vm855_vm9, %v3255_v22, -inf  ;;  %v1355_v35 = vsel %vm855_vm9, %v3259_v50, -inf }
 0x98e   :  { %v1264_v28 = vrot.slane %v1228_v37, %v2818_v1 }
 0x990   :  { %v1283_v43 = vsel %vm188_vm5, %v1264_v28, %v1282_v38 }
 0x991   :  { %v1234_v42 = vpop.xlane.xlu1 %1233  ;;  %v1289_v55 = vsel %vm737_vm8, %v1283_v43, -inf }
 0x992   :  { %v1272_v15 = vrot.slane %v1234_v42, %v2818_v1  ;;  %1290 = vmax.xlane.f32.xlu0 %v1289_v55  ;;  %v1340_v42 = vsel %vm855_vm9, %v3231_v45, -inf  ;;  %v1346_v55 = vsel %vm855_vm9, %v3235_v46, -inf }
 0x994   :  { %v1284_v48 = vsel %vm184_vm3, %v1272_v15, %v1268_v40  ;;  %v1352_v15 = vsel %vm855_vm9, %v3239_v10, -inf }
 0x995   :  { %v1240_v58 = vpop.xlane.xlu1 %1239  ;;  %v1285_v6 = vsel %vm186_vm4, %v1276_v47, %v1284_v48 }
 0x996   :  { %v1280_v4 = vrot.slane %v1240_v58, %v2818_v1 }
 0x998   :  { %v1286_v17 = vsel %vm188_vm5, %v1280_v4, %v1285_v6 }
 0x999   :  { %v1292_v9 = vsel %vm737_vm8, %v1286_v17, -inf }
 0x99a   :  { %1293 = vmax.xlane.f32.xlu1 %v1292_v9 }
 0xa1b   :  { %v3281_v13 = vpop.xlane.xlu0 %1290 }
 0xa1c   :  { %v1295_v49 = vand.u32 2147483647, %v3281_v13 }
 0xa1e   :  { %v1297_v23 = vmul.f32 %v1295_v49, %v2840_v36 }
 0xa20   :  { %1302 = vperm.xlu0 %2659, %v1297_v23  }
 0xa23   :  { %v3285_v54 = vpop.xlane.xlu1 %1293 }
 0xa24   :  { %v1296_v26 = vand.u32 2147483647, %v3285_v54 }
 0xa26   :  { %v1298_v29 = vmul.f32 %v1296_v26, %v2840_v36 }
 0xa28   :  { %1305 = vperm.xlu1 %2660, %v1298_v29  }
 0xa3f   :  { %1335 = vmax.xlane.f32.xlu0 %v1334_v30 }
 0xa43   :  { %1338 = vmax.xlane.f32.xlu0 %v1337_v5 }
 0xa47   :  { %1344 = vmax.xlane.f32.xlu0 %v1343_v3 }
 0xa4b   :  { %1350 = vmax.xlane.f32.xlu0 %v1349_v33 }
 0xa4f   :  { %1356 = vmax.xlane.f32.xlu0 %v1355_v35 }
 0xa9b   :  { %v1303_v37 = vpop.permute.xlu0 %1302 }
 0xa9c   :  { %v1310_v38 = vrot.slane %v1303_v37, %v2818_v1 }
 0xaa3   :  { %v1306_v28 = vpop.permute.xlu1 %1305 }
 0xaa4   :  { %v1314_v40 = vrot.slane %v1306_v28, %v2818_v1 }
 0xaa6   :  { %v1315_v43 = vsel %vm184_vm3, %v1314_v40, %v1310_v38 }
 0xaa7   :  { %v1317_v11 = vsel %vm233_vm10, %v1315_v43, 0.0 }
 0xaa8   :  { %1318 = vadd.xlane.f32.xlu1 %v1317_v11 }
 0xaac   :  { %1341 = vmax.xlane.f32.xlu1 %v1340_v42 }
 0xab0   :  { %1347 = vmax.xlane.f32.xlu1 %v1346_v55 }
 0xab4   :  { %1353 = vmax.xlane.f32.xlu1 %v1352_v15 }
 0xac8   :  { %v1336_v47 = vpop.xlane.xlu0 %1335 }
 0xac9   :  { %v1369_v6 = vrot.slane %v1336_v47, %v2818_v1 }
 0xacc   :  { %v1339_v48 = vpop.xlane.xlu0 %1338 }
 0xacd   :  { %v1373_v17 = vrot.slane %v1339_v48, %v2818_v1 }
 0xacf   :  { %v1398_v29 = vsel %vm184_vm3, %v1373_v17, %v1369_v6 }
 0xad0   :  { %v1345_v58 = vpop.xlane.xlu0 %1344 }
 0xad1   :  { %v1381_v23 = vrot.slane %v1345_v58, %v2818_v1 }
 0xad4   :  { %v1351_v9 = vpop.xlane.xlu0 %1350 }
 0xad5   :  { %v1389_v28 = vrot.slane %v1351_v9, %v2818_v1 }
 0xad8   :  { %v1357_v35 = vpop.xlane.xlu0 %1356 }
 0xad9   :  { %v1397_v40 = vrot.slane %v1357_v35, %v2818_v1 }
 0xb31   :  { %v3309_v4 = vpop.xlane.xlu1 %1318 }
 0xb35   :  { %v1342_v49 = vpop.xlane.xlu1 %1341 }
 0xb36   :  { %v1377_v26 = vrot.slane %v1342_v49, %v2818_v1  ;;  %v1451_v49 = vsel %vm973_vm11, %v3227_v44, -inf }
 0xb38   :  { %v1399_v30 = vsel %vm186_vm4, %v1377_v26, %v1398_v29  ;;  %v1463_v26 = vsel %vm973_vm11, %v3235_v46, -inf  ;;  %v1469_v29 = vsel %vm973_vm11, %v3239_v10, -inf }
 0xb39   :  { %v1348_v5 = vpop.xlane.xlu1 %1347  ;;  %v1400_v3 = vsel %vm188_vm5, %v1381_v23, %v1399_v30  ;;  %v1457_v23 = vsel %vm973_vm11, %v3231_v45, -inf }
 0xb3a   :  { %v1406_v33 = vsel %vm737_vm8, %v1400_v3, -inf  ;;  %v1385_v37 = vrot.slane %v1348_v5, %v2818_v1 }
 0xb3b   :  { %1407 = vmax.xlane.f32.xlu1 %v1406_v33 }
 0xb3c   :  { %v1401_v11 = vsel %vm184_vm3, %v1389_v28, %v1385_v37  ;;  %v1454_v28 = vsel %vm973_vm11, %v3246_v7, -inf }
 0xb3d   :  { %v1354_v38 = vpop.xlane.xlu1 %1353 }
 0xb3e   :  { %v1393_v43 = vrot.slane %v1354_v38, %v2818_v1  ;;  %v1460_v38 = vsel %vm973_vm11, %v3251_v19, -inf }
 0xb40   :  { %v1402_v42 = vsel %vm186_vm4, %v1393_v43, %v1401_v11  ;;  %v1472_v43 = vsel %vm973_vm11, %v3259_v50, -inf }
 0xb41   :  { %v1403_v55 = vsel %vm188_vm5, %v1397_v40, %v1402_v42  ;;  %v1466_v40 = vsel %vm973_vm11, %v3255_v22, -inf }
 0xb42   :  { %v1409_v15 = vsel %vm737_vm8, %v1403_v55, -inf }
 0xb43   :  { %1410 = vmax.xlane.f32.xlu0 %v1409_v15 }
 0xbc4   :  { %v3327_v47 = vpop.xlane.xlu1 %1407 }
 0xbc5   :  { %v1412_v48 = vand.u32 2147483647, %v3327_v47 }
 0xbc7   :  { %v1414_v58 = vmul.f32 %v1412_v48, %v2840_v36 }
 0xbc9   :  { %1419 = vperm.xlu1 %2660, %v1414_v58  }
 0xbcc   :  { %v3331_v6 = vpop.xlane.xlu0 %1410 }
 0xbcd   :  { %v1413_v17 = vand.u32 2147483647, %v3331_v6 }
 0xbcf   :  { %v1415_v9 = vmul.f32 %v1413_v17, %v2840_v36 }
 0xbd1   :  { %1422 = vperm.xlu0 %2659, %v1415_v9  }
 0xbf0   :  { %1452 = vmax.xlane.f32.xlu0 %v1451_v49 }
 0xbf4   :  { %1458 = vmax.xlane.f32.xlu0 %v1457_v23 }
 0xbf8   :  { %1464 = vmax.xlane.f32.xlu0 %v1463_v26 }
 0xbfc   :  { %1470 = vmax.xlane.f32.xlu0 %v1469_v29 }
 0xc44   :  { %v1420_v30 = vpop.permute.xlu1 %1419 }
 0xc45   :  { %v1427_v3 = vrot.slane %v1420_v30, %v2818_v1 }
 0xc4c   :  { %v1423_v5 = vpop.permute.xlu0 %1422 }
 0xc4d   :  { %v1431_v33 = vrot.slane %v1423_v5, %v2818_v1 }
 0xc4f   :  { %v1432_v35 = vsel %vm184_vm3, %v1431_v33, %v1427_v3 }
 0xc50   :  { %v1434_v37 = vsel %vm233_vm10, %v1432_v35, 0.0 }
 0xc51   :  { %1435 = vadd.xlane.f32.xlu1 %v1434_v37 }
 0xc55   :  { %1455 = vmax.xlane.f32.xlu1 %v1454_v28 }
 0xc59   :  { %1461 = vmax.xlane.f32.xlu1 %v1460_v38 }
 0xc5d   :  { %1467 = vmax.xlane.f32.xlu1 %v1466_v40 }
 0xc61   :  { %1473 = vmax.xlane.f32.xlu1 %v1472_v43 }
 0xc79   :  { %v1453_v11 = vpop.xlane.xlu0 %1452 }
 0xc7a   :  { %v1486_v15 = vrot.slane %v1453_v11, %v2818_v1 }
 0xc7d   :  { %v1459_v42 = vpop.xlane.xlu0 %1458 }
 0xc7e   :  { %v1494_v9 = vrot.slane %v1459_v42, %v2818_v1 }
 0xc81   :  { %v1465_v17 = vpop.xlane.xlu0 %1464 }
 0xc82   :  { %v1502_v30 = vrot.slane %v1465_v17, %v2818_v1 }
 0xc85   :  { %v1471_v3 = vpop.xlane.xlu0 %1470 }
 0xc86   :  { %v1510_v28 = vrot.slane %v1471_v3, %v2818_v1  ;;  %v1589_v3 = vsel %vm1091_vm12, %v3259_v50, -inf  ;;  %v1586_v50 = vsel %vm1091_vm12, %v3239_v10, -inf }
 0xcda   :  { %v3355_v55 = vpop.xlane.xlu1 %1435 }
 0xcde   :  { %v1456_v48 = vpop.xlane.xlu1 %1455 }
 0xcdf   :  { %v1490_v58 = vrot.slane %v1456_v48, %v2818_v1 }
 0xce1   :  { %v1515_v49 = vsel %vm184_vm3, %v1490_v58, %v1486_v15 }
 0xce2   :  { %v1462_v23 = vpop.xlane.xlu1 %1461  ;;  %v1516_v29 = vsel %vm186_vm4, %v1494_v9, %v1515_v49 }
 0xce3   :  { %v1498_v26 = vrot.slane %v1462_v23, %v2818_v1 }
 0xce5   :  { %v1517_v5 = vsel %vm188_vm5, %v1498_v26, %v1516_v29  ;;  %v1568_v26 = vsel %vm1091_vm12, %v3227_v44, -inf  ;;  %v1571_v29 = vsel %vm1091_vm12, %v3246_v7, -inf }
 0xce6   :  { %v1468_v33 = vpop.xlane.xlu1 %1467  ;;  %v1523_v35 = vsel %vm737_vm8, %v1517_v5, -inf  ;;  %v1583_v5 = vsel %vm1091_vm12, %v3255_v22, -inf  ;;  %v1580_v22 = vsel %vm1091_vm12, %v3235_v46, -inf }
 0xce7   :  { %v1506_v37 = vrot.slane %v1468_v33, %v2818_v1  ;;  %1524 = vmax.xlane.f32.xlu0 %v1523_v35 }
 0xce9   :  { %v1518_v38 = vsel %vm184_vm3, %v1506_v37, %v1502_v30  ;;  %v1577_v30 = vsel %vm1091_vm12, %v3251_v19, -inf  ;;  %v1574_v19 = vsel %vm1091_vm12, %v3231_v45, -inf }
 0xcea   :  { %v1474_v40 = vpop.xlane.xlu1 %1473  ;;  %v1519_v11 = vsel %vm186_vm4, %v1510_v28, %v1518_v38 }
 0xceb   :  { %v1514_v43 = vrot.slane %v1474_v40, %v2818_v1 }
 0xced   :  { %v1520_v42 = vsel %vm188_vm5, %v1514_v43, %v1519_v11 }
 0xcee   :  { %v1526_v15 = vsel %vm737_vm8, %v1520_v42, -inf }
 0xcef   :  { %1527 = vmax.xlane.f32.xlu1 %v1526_v15 }
 0xd70   :  { %v3373_v48 = vpop.xlane.xlu0 %1524 }
 0xd71   :  { %v1529_v58 = vand.u32 2147483647, %v3373_v48 }
 0xd73   :  { %v1531_v17 = vmul.f32 %v1529_v58, %v2840_v36 }
 0xd75   :  { %1536 = vperm.xlu0 %2659, %v1531_v17  }
 0xd78   :  { %v3377_v9 = vpop.xlane.xlu1 %1527 }
 0xd79   :  { %v1530_v49 = vand.u32 2147483647, %v3377_v9 }
 0xd7b   :  { %v1532_v23 = vmul.f32 %v1530_v49, %v2840_v36 }
 0xd7d   :  { %1539 = vperm.xlu1 %2660, %v1532_v23  }
 0xd94   :  { %1569 = vmax.xlane.f32.xlu0 %v1568_v26 }
 0xd98   :  { %1572 = vmax.xlane.f32.xlu0 %v1571_v29 }
 0xd9c   :  { %1578 = vmax.xlane.f32.xlu0 %v1577_v30 }
 0xda0   :  { %1584 = vmax.xlane.f32.xlu0 %v1583_v5 }
 0xda4   :  { %1590 = vmax.xlane.f32.xlu0 %v1589_v3 }
 0xdf0   :  { %v1537_v33 = vpop.permute.xlu0 %1536 }
 0xdf1   :  { %v1544_v44 = vrot.slane %v1537_v33, %v2818_v1 }
 0xdf8   :  { %v1540_v35 = vpop.permute.xlu1 %1539 }
 0xdf9   :  { %v1548_v37 = vrot.slane %v1540_v35, %v2818_v1 }
 0xdfb   :  { %v1549_v7 = vsel %vm184_vm3, %v1548_v37, %v1544_v44 }
 0xdfc   :  { %v1551_v28 = vsel %vm233_vm10, %v1549_v7, 0.0 }
 0xdfd   :  { %1552 = vadd.xlane.f32.xlu1 %v1551_v28 }
 0xe01   :  { %1575 = vmax.xlane.f32.xlu1 %v1574_v19 }
 0xe05   :  { %1581 = vmax.xlane.f32.xlu1 %v1580_v22 }
 0xe09   :  { %1587 = vmax.xlane.f32.xlu1 %v1586_v50 }
 0xe1d   :  { %v1570_v38 = vpop.xlane.xlu0 %1569 }
 0xe1e   :  { %v1603_v42 = vrot.slane %v1570_v38, %v2818_v1 }
 0xe21   :  { %v1573_v40 = vpop.xlane.xlu0 %1572 }
 0xe22   :  { %v1607_v15 = vrot.slane %v1573_v40, %v2818_v1 }
 0xe24   :  { %v1632_v49 = vsel %vm184_vm3, %v1607_v15, %v1603_v42  ;;  %v3427_v15 = vld [vmem:[#allocation2 + $0x8] sm:$0xf] }
 0xe25   :  { %v1579_v43 = vpop.xlane.xlu0 %1578 }
 0xe26   :  { %v1615_v17 = vrot.slane %v1579_v43, %v2818_v1 }
 0xe29   :  { %v1585_v58 = vpop.xlane.xlu0 %1584 }
 0xe2a   :  { %v1623_v3 = vrot.slane %v1585_v58, %v2818_v1  ;;  %v1693_v58 = vsel %vm737_vm8, %v3427_v15, -inf }
 0xe2d   :  { %v1591_v30 = vpop.xlane.xlu0 %1590 }
 0xe2e   :  { %v1631_v35 = vrot.slane %v1591_v30, %v2818_v1 }
 0xe86   :  { %v3401_v11 = vpop.xlane.xlu1 %1552 }
 0xe87   :  { %3881 = vst [vmem:[#allocation8_spill] sm:$0xff] %v3401_v11 }
 0xe8a   :  { %v1576_v45 = vpop.xlane.xlu1 %1575 }
 0xe8b   :  { %v1611_v46 = vrot.slane %v1576_v45, %v2818_v1  ;;  %v3431_v45 = vld [vmem:[#allocation2 + $0x28] sm:$0xf] }
 0xe8d   :  { %v1633_v10 = vsel %vm186_vm4, %v1611_v46, %v1632_v49  ;;  %v3435_v46 = vld [vmem:[#allocation2 + $0x48] sm:$0xf] }
 0xe8e   :  { %v1582_v23 = vpop.xlane.xlu1 %1581  ;;  %v1634_v26 = vsel %vm188_vm5, %v1615_v17, %v1633_v10  ;;  %v1699_v17 = vsel %vm737_vm8, %v3431_v45, -inf  ;;  %v1705_v49 = vsel %vm737_vm8, %v3435_v46, -inf  ;;  %v3439_v10 = vld [vmem:[#allocation2 + $0x68] sm:$0xf] }
 0xe8f   :  { %v1640_v29 = vsel %vm737_vm8, %v1634_v26, -inf  ;;  %v1619_v5 = vrot.slane %v1582_v23, %v2818_v1  ;;  %v1711_v23 = vsel %vm737_vm8, %v3439_v10, -inf }
 0xe90   :  { %1641 = vmax.xlane.f32.xlu1 %v1640_v29 }
 0xe91   :  { %v1635_v37 = vsel %vm184_vm3, %v1623_v3, %v1619_v5 }
 0xe92   :  { %v1588_v33 = vpop.xlane.xlu1 %1587 }
 0xe93   :  { %v1627_v44 = vrot.slane %v1588_v33, %v2818_v1  ;;  %v3446_v33 = vld [vmem:[#allocation2 + $0x18] sm:$0xf] }
 0xe95   :  { %v1636_v7 = vsel %vm186_vm4, %v1627_v44, %v1635_v37  ;;  %v1696_v44 = vsel %vm737_vm8, %v3446_v33, -inf  ;;  %v3451_v37 = vld [vmem:[#allocation2 + $0x38] sm:$0xf] }
 0xe96   :  { %v1637_v28 = vsel %vm188_vm5, %v1631_v35, %v1636_v7  ;;  %v1702_v7 = vsel %vm737_vm8, %v3451_v37, -inf }
 0xe97   :  { %v1643_v19 = vsel %vm737_vm8, %v1637_v28, -inf  ;;  %v3455_v28 = vld [vmem:[#allocation2 + $0x58] sm:$0xf] }
 0xe98   :  { %1644 = vmax.xlane.f32.xlu0 %v1643_v19  ;;  %v1708_v19 = vsel %vm737_vm8, %v3455_v28, -inf }
 0xf19   :  { %v3419_v22 = vpop.xlane.xlu1 %1641 }
 0xf1a   :  { %v1646_v50 = vand.u32 2147483647, %v3419_v22 }
 0xf1c   :  { %v1648_v38 = vmul.f32 %v1646_v50, %v2840_v36  ;;  %v3459_v50 = vld [vmem:[#allocation2 + $0x78] sm:$0xf] }
 0xf1e   :  { %1653 = vperm.xlu1 %2660, %v1648_v38   ;;  %v1714_v38 = vsel %vm737_vm8, %v3459_v50, -inf }
 0xf21   :  { %v3423_v40 = vpop.xlane.xlu0 %1644 }
 0xf22   :  { %v1647_v43 = vand.u32 2147483647, %v3423_v40 }
 0xf24   :  { %v1649_v42 = vmul.f32 %v1647_v43, %v2840_v36 }
 0xf26   :  { %1656 = vperm.xlu0 %2659, %v1649_v42  }
 0xf45   :  { %1694 = vmax.xlane.f32.xlu0 %v1693_v58 }
 0xf49   :  { %1700 = vmax.xlane.f32.xlu0 %v1699_v17 }
 0xf4d   :  { %1706 = vmax.xlane.f32.xlu0 %v1705_v49 }
 0xf51   :  { %1712 = vmax.xlane.f32.xlu0 %v1711_v23 }
 0xf99   :  { %v1654_v26 = vpop.permute.xlu1 %1653 }
 0xf9a   :  { %v1661_v30 = vrot.slane %v1654_v26, %v2818_v1 }
 0xfa1   :  { %v1657_v29 = vpop.permute.xlu0 %1656 }
 0xfa2   :  { %v1665_v5 = vrot.slane %v1657_v29, %v2818_v1 }
 0xfa4   :  { %v1666_v3 = vsel %vm184_vm3, %v1665_v5, %v1661_v30 }
 0xfa5   :  { %v1668_v35 = vsel %vm233_vm10, %v1666_v3, 0.0 }
 0xfa6   :  { %1669 = vadd.xlane.f32.xlu1 %v1668_v35 }
 0xfaa   :  { %1697 = vmax.xlane.f32.xlu1 %v1696_v44 }
 0xfae   :  { %1703 = vmax.xlane.f32.xlu1 %v1702_v7 }
 0xfb2   :  { %1709 = vmax.xlane.f32.xlu1 %v1708_v19 }
 0xfb6   :  { %1715 = vmax.xlane.f32.xlu1 %v1714_v38 }
 0xfce   :  { %v1695_v43 = vpop.xlane.xlu0 %1694 }
 0xfcf   :  { %v1728_v17 = vrot.slane %v1695_v43, %v2818_v1 }
 0xfd2   :  { %v1701_v42 = vpop.xlane.xlu0 %1700 }
 0xfd3   :  { %v1736_v29 = vrot.slane %v1701_v42, %v2818_v1 }
 0xfd6   :  { %v1707_v26 = vpop.xlane.xlu0 %1706 }
 0xfd7   :  { %v1744_v44 = vrot.slane %v1707_v26, %v2818_v1 }
 0xfda   :  { %v1713_v19 = vpop.xlane.xlu0 %1712 }
 0xfdb   :  { %v1752_v42 = vrot.slane %v1713_v19, %v2818_v1 }
0x102f   :  { %v3463_v58 = vpop.xlane.xlu1 %1669 }
0x1030   :  { %3882 = vst [vmem:[#allocation9_spill] sm:$0xff] %v3463_v58 }
0x1033   :  { %v1698_v49 = vpop.xlane.xlu1 %1697 }
0x1034   :  { %v1732_v23 = vrot.slane %v1698_v49, %v2818_v1 }
0x1036   :  { %v1757_v30 = vsel %vm184_vm3, %v1732_v23, %v1728_v17 }
0x1037   :  { %v1704_v5 = vpop.xlane.xlu1 %1703  ;;  %v1758_v35 = vsel %vm186_vm4, %v1736_v29, %v1757_v30 }
0x1038   :  { %v1740_v3 = vrot.slane %v1704_v5, %v2818_v1 }
0x103a   :  { %v1759_v7 = vsel %vm188_vm5, %v1740_v3, %v1758_v35 }
0x103b   :  { %v1710_v38 = vpop.xlane.xlu1 %1709  ;;  %v1765_v43 = vsel %vm737_vm8, %v1759_v7, -inf }
0x103c   :  { %v1748_v49 = vrot.slane %v1710_v38, %v2818_v1  ;;  %1766 = vmax.xlane.f32.xlu0 %v1765_v43  ;;  %v1810_v43 = vsel %vm855_vm9, %v3427_v15, -inf }
0x103e   :  { %v1760_v17 = vsel %vm184_vm3, %v1748_v49, %v1744_v44  ;;  %v1813_v49 = vsel %vm855_vm9, %v3446_v33, -inf }
0x103f   :  { %v1716_v23 = vpop.xlane.xlu1 %1715  ;;  %v1761_v29 = vsel %vm186_vm4, %v1752_v42, %v1760_v17  ;;  %v1819_v42 = vsel %vm855_vm9, %v3451_v37, -inf  ;;  %v1825_v17 = vsel %vm855_vm9, %v3455_v28, -inf }
0x1040   :  { %v1756_v5 = vrot.slane %v1716_v23, %v2818_v1  ;;  %v1831_v23 = vsel %vm855_vm9, %v3459_v50, -inf }
0x1042   :  { %v1762_v26 = vsel %vm188_vm5, %v1756_v5, %v1761_v29 }
0x1043   :  { %v1768_v30 = vsel %vm737_vm8, %v1762_v26, -inf }
0x1044   :  { %1769 = vmax.xlane.f32.xlu1 %v1768_v30 }
0x10c5   :  { %v3481_v3 = vpop.xlane.xlu0 %1766 }
0x10c6   :  { %3883 = vst [vmem:[#allocation10_spill] sm:$0xff] %v3481_v3  ;;  %v1771_v35 = vand.u32 2147483647, %v3481_v3 }
0x10c8   :  { %v1773_v7 = vmul.f32 %v1771_v35, %v2840_v36 }
0x10ca   :  { %1778 = vperm.xlu0 %2659, %v1773_v7  }
0x10cd   :  { %v3485_v19 = vpop.xlane.xlu1 %1769 }
0x10ce   :  { %v1772_v44 = vand.u32 2147483647, %v3485_v19 }
0x10d0   :  { %v1774_v38 = vmul.f32 %v1772_v44, %v2840_v36  ;;  %v1816_v44 = vsel %vm855_vm9, %v3431_v45, -inf }
0x10d2   :  { %1781 = vperm.xlu1 %2660, %v1774_v38   ;;  %v1822_v38 = vsel %vm855_vm9, %v3435_v46, -inf }
0x10e9   :  { %1811 = vmax.xlane.f32.xlu0 %v1810_v43  ;;  %v1828_v43 = vsel %vm855_vm9, %v3439_v10, -inf }
0x10ed   :  { %1814 = vmax.xlane.f32.xlu0 %v1813_v49 }
0x10f1   :  { %1820 = vmax.xlane.f32.xlu0 %v1819_v42 }
0x10f5   :  { %1826 = vmax.xlane.f32.xlu0 %v1825_v17 }
0x10f9   :  { %1832 = vmax.xlane.f32.xlu0 %v1831_v23 }
0x1145   :  { %v1779_v5 = vpop.permute.xlu0 %1778 }
0x1146   :  { %v1786_v26 = vrot.slane %v1779_v5, %v2818_v1 }
0x114d   :  { %v1782_v29 = vpop.permute.xlu1 %1781 }
0x114e   :  { %v1790_v30 = vrot.slane %v1782_v29, %v2818_v1 }
0x1150   :  { %v1791_v35 = vsel %vm184_vm3, %v1790_v30, %v1786_v26 }
0x1151   :  { %v1793_v7 = vsel %vm233_vm10, %v1791_v35, 0.0 }
0x1152   :  { %1794 = vadd.xlane.f32.xlu1 %v1793_v7 }
0x1156   :  { %1817 = vmax.xlane.f32.xlu1 %v1816_v44 }
0x115a   :  { %1823 = vmax.xlane.f32.xlu1 %v1822_v38 }
0x115e   :  { %1829 = vmax.xlane.f32.xlu1 %v1828_v43 }
0x1172   :  { %v1812_v49 = vpop.xlane.xlu0 %1811 }
0x1173   :  { %v1845_v5 = vrot.slane %v1812_v49, %v2818_v1 }
0x1176   :  { %v1815_v42 = vpop.xlane.xlu0 %1814 }
0x1177   :  { %v1849_v29 = vrot.slane %v1815_v42, %v2818_v1 }
0x1179   :  { %v1874_v44 = vsel %vm184_vm3, %v1849_v29, %v1845_v5 }
0x117a   :  { %v1821_v17 = vpop.xlane.xlu0 %1820 }
0x117b   :  { %v1857_v35 = vrot.slane %v1821_v17, %v2818_v1 }
0x117e   :  { %v1827_v26 = vpop.xlane.xlu0 %1826 }
0x117f   :  { %v1865_v42 = vrot.slane %v1827_v26, %v2818_v1 }
0x11db   :  { %v3509_v23 = vpop.xlane.xlu1 %1794 }
0x11dc   :  { %3884 = vst [vmem:[#allocation11_spill] sm:$0xff] %v3509_v23  ;;  %v1833_v23 = vpop.xlane.xlu0 %1832 }
0x11dd   :  { %v1873_v17 = vrot.slane %v1833_v23, %v2818_v1 }
0x11df   :  { %v1818_v30 = vpop.xlane.xlu1 %1817 }
0x11e0   :  { %v1853_v7 = vrot.slane %v1818_v30, %v2818_v1 }
0x11e2   :  { %v1875_v38 = vsel %vm186_vm4, %v1853_v7, %v1874_v44 }
0x11e3   :  { %v1824_v43 = vpop.xlane.xlu1 %1823  ;;  %v1876_v58 = vsel %vm188_vm5, %v1857_v35, %v1875_v38  ;;  %v1927_v38 = vsel %vm973_vm11, %v3427_v15, -inf }
0x11e4   :  { %v1882_v3 = vsel %vm737_vm8, %v1876_v58, -inf  ;;  %v1861_v49 = vrot.slane %v1824_v43, %v2818_v1  ;;  %v1933_v43 = vsel %vm973_vm11, %v3431_v45, -inf }
0x11e5   :  { %1883 = vmax.xlane.f32.xlu1 %v1882_v3 }
0x11e6   :  { %v1877_v5 = vsel %vm184_vm3, %v1865_v42, %v1861_v49  ;;  %v1939_v49 = vsel %vm973_vm11, %v3435_v46, -inf  ;;  %v1945_v42 = vsel %vm973_vm11, %v3439_v10, -inf }
0x11e7   :  { %v1830_v11 = vpop.xlane.xlu1 %1829 }
0x11e8   :  { %v1869_v30 = vrot.slane %v1830_v11, %v2818_v1 }
0x11ea   :  { %v1878_v29 = vsel %vm186_vm4, %v1869_v30, %v1877_v5 }
0x11eb   :  { %v1879_v7 = vsel %vm188_vm5, %v1873_v17, %v1878_v29 }
0x11ec   :  { %v1885_v35 = vsel %vm737_vm8, %v1879_v7, -inf }
0x11ed   :  { %1886 = vmax.xlane.f32.xlu0 %v1885_v35 }
0x126e   :  { %v3527_v58 = vpop.xlane.xlu1 %1883 }
0x126f   :  { %v1888_v44 = vand.u32 2147483647, %v3527_v58 }
0x1271   :  { %v1890_v3 = vmul.f32 %v1888_v44, %v2840_v36  ;;  %v1930_v44 = vsel %vm973_vm11, %v3446_v33, -inf }
0x1273   :  { %1895 = vperm.xlu1 %2660, %v1890_v3   ;;  %v1936_v3 = vsel %vm973_vm11, %v3451_v37, -inf }
0x1276   :  { %v3531_v26 = vpop.xlane.xlu0 %1886 }
0x1277   :  { %v1889_v11 = vand.u32 2147483647, %v3531_v26 }
0x1279   :  { %v1891_v23 = vmul.f32 %v1889_v11, %v2840_v36  ;;  %v1942_v11 = vsel %vm973_vm11, %v3455_v28, -inf }
0x127b   :  { %1898 = vperm.xlu0 %2659, %v1891_v23   ;;  %v1948_v23 = vsel %vm973_vm11, %v3459_v50, -inf }
0x129a   :  { %1928 = vmax.xlane.f32.xlu0 %v1927_v38  ;;  %v246_v38 = vrot.slane %v3049_v51, %v2818_v1 }
0x129e   :  { %1934 = vmax.xlane.f32.xlu0 %v1933_v43  ;;  %v373_v43 = vrot.slane %v2914_v59, %v2818_v1  ;;  %v486_v59 = vrot.slane %v2918_v61, %v2818_v1  ;;  %v720_v61 = vrot.slane %v3009_v53, %v2818_v1  ;;  %v1086_v53 = vrot.slane %v3177_v16, %v2818_v1 }
0x129f   :  { %v1200_v16 = vrot.slane %v3219_v24, %v2818_v1  ;;  %v1442_v24 = vrot.slane %v3327_v47, %v2818_v1  ;;  %v1676_v47 = vrot.slane %v3419_v22, %v2818_v1  ;;  %v1922_v22 = vrot.slane %v3531_v26, %v2818_v1 }
0x12a2   :  { %1940 = vmax.xlane.f32.xlu0 %v1939_v49  ;;  %v242_v49 = vrot.slane %v2922_v0, %v2818_v1  ;;  %v607_v0 = vrot.slane %v2958_v32, %v2818_v1  ;;  %v850_v32 = vrot.slane %v3051_v52, %v2818_v1 }
0x12a6   :  { %1946 = vmax.xlane.f32.xlu0 %v1945_v42  ;;  %v369_v42 = vrot.slane %v2916_v60, %v2818_v1 }
0x12ee   :  { %v1896_v17 = vpop.permute.xlu1 %1895 }
0x12ef   :  { %v1903_v5 = vrot.slane %v1896_v17, %v2818_v1  ;;  %v247_v17 = vsel %vm184_vm3, %v246_v38, %v242_v49  ;;  %v1082_v49 = vrot.slane %v3173_v31, %v2818_v1 }
0x12f6   :  { %v1899_v30 = vpop.permute.xlu0 %1898 }
0x12f7   :  { %v1907_v29 = vrot.slane %v1899_v30, %v2818_v1  ;;  %v249_v30 = vmul.f32 %v247_v17, %v3107_v20  ;;  %v603_v20 = vrot.slane %v2956_v12, %v2818_v1  ;;  %v968_v12 = vrot.slane %v3131_v21, %v2818_v1 }
0x12f9   :  { %v1908_v7 = vsel %vm184_vm3, %v1907_v29, %v1903_v5  ;;  %v490_v5 = vrot.slane %v2920_v62, %v2818_v1  ;;  %v374_v29 = vsel %vm184_vm3, %v373_v43, %v369_v42  ;;  %v724_v62 = vrot.slane %v3011_v25, %v2818_v1 }
0x12fa   :  { %v1910_v35 = vsel %vm233_vm10, %v1908_v7, 0.0  ;;  %v376_v51 = vmul.f32 %v374_v29, %v3099_v56  ;;  %v608_v56 = vsel %vm184_vm3, %v607_v0, %v603_v20  ;;  %v846_v25 = vrot.slane %v3045_v18, %v2818_v1 }
0x12fb   :  { %1911 = vadd.xlane.f32.xlu1 %v1910_v35  ;;  %v491_v60 = vsel %vm184_vm3, %v490_v5, %v486_v59  ;;  %v1329_v42 = vrot.slane %v3285_v54, %v2818_v1  ;;  %v1563_v54 = vrot.slane %v3377_v9, %v2818_v1  ;;  %v1805_v9 = vrot.slane %v3485_v19, %v2818_v1 }
0x12fc   :  { %v377_v7 = vadd.f32 %v376_v51, %v249_v30  ;;  %v493_v35 = vmul.f32 %v491_v60, %v3101_v2  ;;  %v725_v2 = vsel %vm184_vm3, %v724_v62, %v720_v61  ;;  %v851_v43 = vsel %vm184_vm3, %v850_v32, %v846_v25  ;;  %v3885_v60 = vld [vmem:[#allocation8_spill] sm:$0xff] }
0x12fd   :  { %v853_v21 = vmul.f32 %v851_v43, %v3109_v34  ;;  %v1446_v34 = vrot.slane %v3331_v6, %v2818_v1  ;;  %v1680_v6 = vrot.slane %v3423_v40, %v2818_v1  ;;  %v1918_v32 = vrot.slane %v3527_v58, %v2818_v1 }
0x12ff   :  { %1931 = vmax.xlane.f32.xlu1 %v1930_v44  ;;  %v494_v44 = vadd.f32 %v493_v35, %v377_v7  ;;  %v1447_v59 = vsel %vm184_vm3, %v1446_v34, %v1442_v24 }
0x1300   :  { %v1449_v7 = vmul.f32 %v1447_v59, %v3355_v55 }
0x1303   :  { %1937 = vmax.xlane.f32.xlu1 %v1936_v3  ;;  %v610_v3 = vmul.f32 %v608_v56, %v3103_v57  ;;  %v964_v57 = vrot.slane %v3127_v14, %v2818_v1  ;;  %v1087_v14 = vsel %vm184_vm3, %v1086_v53, %v1082_v49  ;;  %v3887_v56 = vld [vmem:[#allocation9_spill] sm:$0xff] }
0x1304   :  { %v1089_v30 = vmul.f32 %v1087_v14, %v3201_v63 }
0x1305   :  { %v969_v52 = vsel %vm184_vm3, %v968_v12, %v964_v57 }
0x1306   :  { %v971_v18 = vmul.f32 %v969_v52, %v3155_v41 }
0x1307   :  { %1943 = vmax.xlane.f32.xlu1 %v1942_v11  ;;  %v611_v11 = vadd.f32 %v610_v3, %v494_v44  ;;  %v3886_v44 = vld [vmem:[#allocation10_spill] sm:$0xff] }
0x1308   :  { %v1801_v40 = vrot.slane %v3886_v44, %v2818_v1  ;;  %v2168_v44 = vld [vmem:[#allocation2 + $0x7c] sm:$0xf] }
0x130a   :  { %v1806_v3 = vsel %vm184_vm3, %v1805_v9, %v1801_v40  ;;  %v2053_v9 = vsel %vm1091_vm12, %v3451_v37, -inf }
0x130b   :  { %1949 = vmax.xlane.f32.xlu1 %v1948_v23  ;;  %v727_v23 = vmul.f32 %v725_v2, %v3105_v8  ;;  %v1204_v8 = vrot.slane %v3223_v39, %v2818_v1  ;;  %v1325_v39 = vrot.slane %v3281_v13, %v2818_v1  ;;  %v1559_v13 = vrot.slane %v3373_v48, %v2818_v1 }
0x130c   :  { %v1681_v48 = vsel %vm184_vm3, %v1680_v6, %v1676_v47  ;;  %v2047_v47 = vsel %vm1091_vm12, %v3446_v33, -inf }
0x130d   :  { %v728_v38 = vadd.f32 %v727_v23, %v611_v11  ;;  %v1205_v31 = vsel %vm184_vm3, %v1204_v8, %v1200_v16  ;;  %v1330_v29 = vsel %vm184_vm3, %v1329_v42, %v1325_v39  ;;  %v1564_v0 = vsel %vm184_vm3, %v1563_v54, %v1559_v13  ;;  %v3888_v11 = vld [vmem:[#allocation11_spill] sm:$0xff] }
0x130e   :  { %v1207_v5 = vmul.f32 %v1205_v31, %v3263_v27  ;;  %v1332_v51 = vmul.f32 %v1330_v29, %v3309_v4  ;;  %v1566_v35 = vmul.f32 %v1564_v0, %v3885_v60  ;;  %v1683_v55 = vmul.f32 %v1681_v48, %v3887_v56  ;;  %v2167_v48 = vld [vmem:[#allocation2 + $0x6c] sm:$0xf] }
0x130f   :  { %v854_v17 = vadd.f32 %v853_v21, %v728_v38  ;;  %v1808_v19 = vmul.f32 %v1806_v3, %v3888_v11  ;;  %v1923_v23 = vsel %vm184_vm3, %v1922_v22, %v1918_v32  ;;  %v2044_v0 = vsel %vm1091_vm12, %v3427_v15, -inf }
0x1310   :  { %v2065_v60 = vsel %vm1091_vm12, %v3459_v50, -inf  ;;  %v2187_v37 = vsel %vm737_vm8, %v2167_v48, -inf  ;;  %v2307_v56 = vsel %vm855_vm9, %v2168_v44, -inf  ;;  %v2421_v22 = vsel %vm973_vm11, %v2167_v48, -inf }
0x1311   :  { %v972_v41 = vadd.f32 %v971_v18, %v854_v17  ;;  %v2538_v32 = vsel %vm1091_vm12, %v2167_v48, -inf }
0x1313   :  { %v1090_v63 = vadd.f32 %v1089_v30, %v972_v41 }
0x1315   :  { %v1208_v27 = vadd.f32 %v1207_v5, %v1090_v63 }
0x1317   :  { %v1333_v4 = vadd.f32 %v1332_v51, %v1208_v27 }
0x1319   :  { %v1450_v62 = vadd.f32 %v1449_v7, %v1333_v4  ;;  %v2059_v4 = vsel %vm1091_vm12, %v3455_v28, -inf  ;;  %v2190_v28 = vsel %vm737_vm8, %v2168_v44, -inf }
0x131b   :  { %v1567_v61 = vadd.f32 %v1566_v35, %v1450_v62  ;;  %v2162_v35 = vld [vmem:[#allocation2 + $0x1c] sm:$0xf]  ;;  %v2304_v62 = vsel %vm855_vm9, %v2167_v48, -inf }
0x131c   :  { %v2172_v15 = vsel %vm737_vm8, %v2162_v35, -inf  ;;  %v2289_v40 = vsel %vm855_vm9, %v2162_v35, -inf  ;;  %v2523_v11 = vsel %vm1091_vm12, %v2162_v35, -inf }
0x131d   :  { %v1684_v2 = vadd.f32 %v1683_v55, %v1567_v61  ;;  %v2406_v55 = vsel %vm973_vm11, %v2162_v35, -inf  ;;  %v2424_v61 = vsel %vm973_vm11, %v2168_v44, -inf }
0x131f   :  { %v1809_v57 = vadd.f32 %v1808_v19, %v1684_v2  ;;  %v2541_v2 = vsel %vm1091_vm12, %v2168_v44, -inf }
0x1323   :  { %v1929_v20 = vpop.xlane.xlu0 %1928 }
0x1324   :  { %v1962_v43 = vrot.slane %v1929_v20, %v2818_v1  ;;  %v2166_v20 = vld [vmem:[#allocation2 + $0x5c] sm:$0xf] }
0x1325   :  { %v2184_v33 = vsel %vm737_vm8, %v2166_v20, -inf  ;;  %v2301_v50 = vsel %vm855_vm9, %v2166_v20, -inf  ;;  %v2418_v3 = vsel %vm973_vm11, %v2166_v20, -inf  ;;  %v2535_v19 = vsel %vm1091_vm12, %v2166_v20, -inf }
0x1327   :  { %v1935_v12 = vpop.xlane.xlu0 %1934 }
0x1328   :  { %v1970_v8 = vrot.slane %v1935_v12, %v2818_v1 }
0x132b   :  { %v1941_v49 = vpop.xlane.xlu0 %1940 }
0x132c   :  { %v1978_v16 = vrot.slane %v1941_v49, %v2818_v1  ;;  %v2062_v49 = vsel %vm1091_vm12, %v3439_v10, -inf }
0x132f   :  { %v1947_v17 = vpop.xlane.xlu0 %1946 }
0x1330   :  { %v1986_v34 = vrot.slane %v1947_v17, %v2818_v1 }
0x1384   :  { %v1912_v25 = vpop.xlane.xlu1 %1911 }
0x1385   :  { %v1925_v53 = vmul.f32 %v1923_v23, %v1912_v25 }
0x1387   :  { %v3644_v38 = vadd.f32 %v1925_v53, %v1809_v57 }
0x1388   :  { %v1932_v52 = vpop.xlane.xlu1 %1931 }
0x1389   :  { %v1966_v26 = vrot.slane %v1932_v52, %v2818_v1  ;;  %v2050_v52 = vsel %vm1091_vm12, %v3431_v45, -inf }
0x138b   :  { %v1991_v21 = vsel %vm184_vm3, %v1966_v26, %v1962_v43  ;;  %v2056_v26 = vsel %vm1091_vm12, %v3435_v46, -inf }
0x138c   :  { %v1938_v58 = vpop.xlane.xlu1 %1937  ;;  %v1992_v14 = vsel %vm186_vm4, %v1970_v8, %v1991_v21  ;;  %v2161_v8 = vld [vmem:[#allocation2 + $0xc] sm:$0xf] }
0x138d   :  { %v1974_v18 = vrot.slane %v1938_v58, %v2818_v1  ;;  %v2169_v21 = vsel %vm737_vm8, %v2161_v8, -inf  ;;  %v2165_v58 = vld [vmem:[#allocation2 + $0x4c] sm:$0xf] }
0x138e   :  { %v2298_v10 = vsel %vm855_vm9, %v2165_v58, -inf }
0x138f   :  { %v1993_v42 = vsel %vm188_vm5, %v1974_v18, %v1992_v14  ;;  %v2181_v18 = vsel %vm737_vm8, %v2165_v58, -inf  ;;  %v2163_v14 = vld [vmem:[#allocation2 + $0x2c] sm:$0xf] }
0x1390   :  { %v1944_v30 = vpop.xlane.xlu1 %1943  ;;  %v1999_v31 = vsel %vm737_vm8, %v1993_v42, -inf  ;;  %v2175_v45 = vsel %vm737_vm8, %v2163_v14, -inf  ;;  %v2286_v42 = vsel %vm855_vm9, %v2161_v8, -inf  ;;  %v2292_v17 = vsel %vm855_vm9, %v2163_v14, -inf }
0x1391   :  { %v1982_v39 = vrot.slane %v1944_v30, %v2818_v1  ;;  %2000 = vmax.xlane.f32.xlu0 %v1999_v31  ;;  %v2403_v31 = vsel %vm973_vm11, %v2161_v8, -inf }
0x1393   :  { %v1994_v41 = vsel %vm184_vm3, %v1982_v39, %v1978_v16  ;;  %v2164_v16 = vld [vmem:[#allocation2 + $0x3c] sm:$0xf]  ;;  %v2415_v39 = vsel %vm973_vm11, %v2165_v58, -inf }
0x1394   :  { %v1950_v5 = vpop.xlane.xlu1 %1949  ;;  %v1995_v24 = vsel %vm186_vm4, %v1986_v34, %v1994_v41  ;;  %v2178_v46 = vsel %vm737_vm8, %v2164_v16, -inf  ;;  %v2295_v30 = vsel %vm855_vm9, %v2164_v16, -inf  ;;  %v2409_v34 = vsel %vm973_vm11, %v2163_v14, -inf }
0x1395   :  { %v1990_v29 = vrot.slane %v1950_v5, %v2818_v1  ;;  %v2412_v41 = vsel %vm973_vm11, %v2164_v16, -inf  ;;  %v2520_v5 = vsel %vm1091_vm12, %v2161_v8, -inf }
0x1397   :  { %v1996_v54 = vsel %vm188_vm5, %v1990_v29, %v1995_v24  ;;  %v2532_v29 = vsel %vm1091_vm12, %v2165_v58, -inf  ;;  %v2526_v24 = vsel %vm1091_vm12, %v2163_v14, -inf }
0x1398   :  { %v2002_v63 = vsel %vm737_vm8, %v1996_v54, -inf  ;;  %v2529_v54 = vsel %vm1091_vm12, %v2164_v16, -inf }
0x1399   :  { %2003 = vmax.xlane.f32.xlu1 %v2002_v63 }
0x141a   :  { %v3662_v51 = vpop.xlane.xlu0 %2000 }
0x141b   :  { %v2005_v59 = vand.u32 2147483647, %v3662_v51 }
0x141d   :  { %v2007_v13 = vmul.f32 %v2005_v59, %v2840_v36 }
0x141f   :  { %2012 = vperm.xlu0 %2659, %v2007_v13  }
0x1422   :  { %v3666_v6 = vpop.xlane.xlu1 %2003 }
0x1423   :  { %v2006_v27 = vand.u32 2147483647, %v3666_v6 }
0x1425   :  { %v2008_v7 = vmul.f32 %v2006_v27, %v2840_v36 }
0x1427   :  { %2015 = vperm.xlu1 %2660, %v2008_v7  }
0x143e   :  { %2045 = vmax.xlane.f32.xlu0 %v2044_v0 }
0x1442   :  { %2048 = vmax.xlane.f32.xlu0 %v2047_v47 }
0x1446   :  { %2054 = vmax.xlane.f32.xlu0 %v2053_v9  ;;  %v2039_v9 = vrot.slane %v3666_v6, %v2818_v1 }
0x144a   :  { %2060 = vmax.xlane.f32.xlu0 %v2059_v4 }
0x144e   :  { %2066 = vmax.xlane.f32.xlu0 %v2065_v60  ;;  %v2035_v60 = vrot.slane %v3662_v51, %v2818_v1 }
0x1450   :  { %v2040_v35 = vsel %vm184_vm3, %v2039_v9, %v2035_v60 }
0x1452   :  { %2173 = vmax.xlane.f32.xlu0 %v2172_v15 }
0x1456   :  { %2185 = vmax.xlane.f32.xlu0 %v2184_v33 }
0x145a   :  { %2188 = vmax.xlane.f32.xlu0 %v2187_v37 }
0x145e   :  { %2191 = vmax.xlane.f32.xlu0 %v2190_v28 }
0x1462   :  { %2290 = vmax.xlane.f32.xlu0 %v2289_v40 }
0x1466   :  { %2302 = vmax.xlane.f32.xlu0 %v2301_v50 }
0x146a   :  { %2305 = vmax.xlane.f32.xlu0 %v2304_v62 }
0x146e   :  { %2308 = vmax.xlane.f32.xlu0 %v2307_v56 }
0x1472   :  { %2407 = vmax.xlane.f32.xlu0 %v2406_v55 }
0x1476   :  { %2419 = vmax.xlane.f32.xlu0 %v2418_v3 }
0x147a   :  { %2422 = vmax.xlane.f32.xlu0 %v2421_v22 }
0x147e   :  { %2425 = vmax.xlane.f32.xlu0 %v2424_v61 }
0x1482   :  { %2524 = vmax.xlane.f32.xlu0 %v2523_v11 }
0x1486   :  { %2536 = vmax.xlane.f32.xlu0 %v2535_v19 }
0x148a   :  { %2539 = vmax.xlane.f32.xlu0 %v2538_v32 }
0x148e   :  { %2542 = vmax.xlane.f32.xlu0 %v2541_v2 }
0x149a   :  { %v2013_v12 = vpop.permute.xlu0 %2012 }
0x149b   :  { %v2020_v25 = vrot.slane %v2013_v12, %v2818_v1 }
0x14a2   :  { %v2016_v23 = vpop.permute.xlu1 %2015 }
0x14a3   :  { %v2024_v57 = vrot.slane %v2016_v23, %v2818_v1 }
0x14a5   :  { %v2025_v53 = vsel %vm184_vm3, %v2024_v57, %v2020_v25 }
0x14a6   :  { %v2027_v43 = vsel %vm233_vm10, %v2025_v53, 0.0 }
0x14a7   :  { %2028 = vadd.xlane.f32.xlu1 %v2027_v43 }
0x14ab   :  { %2051 = vmax.xlane.f32.xlu1 %v2050_v52 }
0x14af   :  { %2057 = vmax.xlane.f32.xlu1 %v2056_v26 }
0x14b3   :  { %2063 = vmax.xlane.f32.xlu1 %v2062_v49 }
0x14b7   :  { %2170 = vmax.xlane.f32.xlu1 %v2169_v21 }
0x14bb   :  { %2182 = vmax.xlane.f32.xlu1 %v2181_v18 }
0x14bf   :  { %2176 = vmax.xlane.f32.xlu1 %v2175_v45 }
0x14c3   :  { %2179 = vmax.xlane.f32.xlu1 %v2178_v46 }
0x14c7   :  { %2287 = vmax.xlane.f32.xlu1 %v2286_v42  ;;  %v2046_v63 = vpop.xlane.xlu0 %2045 }
0x14c8   :  { %v2079_v33 = vrot.slane %v2046_v63, %v2818_v1 }
0x14cb   :  { %2299 = vmax.xlane.f32.xlu1 %v2298_v10  ;;  %v2049_v59 = vpop.xlane.xlu0 %2048 }
0x14cc   :  { %v2083_v48 = vrot.slane %v2049_v59, %v2818_v1 }
0x14ce   :  { %v2108_v50 = vsel %vm184_vm3, %v2083_v48, %v2079_v33 }
0x14cf   :  { %2293 = vmax.xlane.f32.xlu1 %v2292_v17  ;;  %v2055_v13 = vpop.xlane.xlu0 %2054 }
0x14d0   :  { %v2091_v28 = vrot.slane %v2055_v13, %v2818_v1 }
0x14d3   :  { %2296 = vmax.xlane.f32.xlu1 %v2295_v30  ;;  %v2061_v27 = vpop.xlane.xlu0 %2060 }
0x14d4   :  { %v2099_v22 = vrot.slane %v2061_v27, %v2818_v1 }
0x14d7   :  { %2404 = vmax.xlane.f32.xlu1 %v2403_v31  ;;  %v2067_v7 = vpop.xlane.xlu0 %2066 }
0x14d8   :  { %v2107_v61 = vrot.slane %v2067_v7, %v2818_v1 }
0x14db   :  { %2416 = vmax.xlane.f32.xlu1 %v2415_v39  ;;  %v2174_v0 = vpop.xlane.xlu0 %2173 }
0x14dc   :  { %v2208_v52 = vrot.slane %v2174_v0, %v2818_v1 }
0x14df   :  { %2410 = vmax.xlane.f32.xlu1 %v2409_v34  ;;  %v2186_v47 = vpop.xlane.xlu0 %2185 }
0x14e0   :  { %v2224_v26 = vrot.slane %v2186_v47, %v2818_v1 }
0x14e3   :  { %2413 = vmax.xlane.f32.xlu1 %v2412_v41  ;;  %v2189_v4 = vpop.xlane.xlu0 %2188 }
0x14e4   :  { %v2228_v21 = vrot.slane %v2189_v4, %v2818_v1 }
0x14e7   :  { %2521 = vmax.xlane.f32.xlu1 %v2520_v5  ;;  %v2192_v37 = vpop.xlane.xlu0 %2191 }
0x14e8   :  { %v2232_v46 = vrot.slane %v2192_v37, %v2818_v1 }
0x14eb   :  { %2533 = vmax.xlane.f32.xlu1 %v2532_v29  ;;  %v2291_v55 = vpop.xlane.xlu0 %2290 }
0x14ef   :  { %2527 = vmax.xlane.f32.xlu1 %v2526_v24  ;;  %v2303_v2 = vpop.xlane.xlu0 %2302 }
0x14f0   :  { %v2341_v63 = vrot.slane %v2303_v2, %v2818_v1 }
0x14f3   :  { %2530 = vmax.xlane.f32.xlu1 %v2529_v54  ;;  %v2306_v43 = vpop.xlane.xlu0 %2305  ;;  %v2325_v54 = vrot.slane %v2291_v55, %v2818_v1 }
0x14f4   :  { %v2345_v7 = vrot.slane %v2306_v43, %v2818_v1 }
0x14f7   :  { %v2309_v16 = vpop.xlane.xlu0 %2308 }
0x14f8   :  { %v2349_v60 = vrot.slane %v2309_v16, %v2818_v1 }
0x14fb   :  { %v2408_v5 = vpop.xlane.xlu0 %2407 }
0x14ff   :  { %v2420_v27 = vpop.xlane.xlu0 %2419 }
0x1530   :  { %v2029_v15 = vpop.xlane.xlu1 %2028 }
0x1531   :  { %v2042_v20 = vmul.f32 %v2040_v35, %v2029_v15 }
0x1533   :  { %v3730_v44 = vadd.f32 %v2042_v20, %v3644_v38  ;;  %v2423_v20 = vpop.xlane.xlu0 %2422 }
0x1534   :  { %v2052_v40 = vpop.xlane.xlu1 %2051 }
0x1535   :  { %v2087_v6 = vrot.slane %v2052_v40, %v2818_v1 }
0x1537   :  { %v2109_v51 = vsel %vm186_vm4, %v2087_v6, %v2108_v50 }
0x1538   :  { %v2058_v62 = vpop.xlane.xlu1 %2057  ;;  %v2110_v56 = vsel %vm188_vm5, %v2091_v28, %v2109_v51  ;;  %v2426_v51 = vpop.xlane.xlu0 %2425 }
0x1539   :  { %v2116_v3 = vsel %vm737_vm8, %v2110_v56, -inf  ;;  %v2095_v38 = vrot.slane %v2058_v62, %v2818_v1  ;;  %v2458_v62 = vrot.slane %v2420_v27, %v2818_v1  ;;  %v2462_v56 = vrot.slane %v2423_v20, %v2818_v1 }
0x153a   :  { %2117 = vmax.xlane.f32.xlu1 %v2116_v3  ;;  %v2442_v3 = vrot.slane %v2408_v5, %v2818_v1 }
0x153b   :  { %v2111_v32 = vsel %vm184_vm3, %v2099_v22, %v2095_v38 }
0x153c   :  { %v2064_v11 = vpop.xlane.xlu1 %2063 }
0x153d   :  { %v2103_v19 = vrot.slane %v2064_v11, %v2818_v1  ;;  %v2525_v11 = vpop.xlane.xlu0 %2524 }
0x153e   :  { %v2559_v16 = vrot.slane %v2525_v11, %v2818_v1 }
0x153f   :  { %v2112_v12 = vsel %vm186_vm4, %v2103_v19, %v2111_v32 }
0x1540   :  { %v2171_v23 = vpop.xlane.xlu1 %2170  ;;  %v2113_v25 = vsel %vm188_vm5, %v2107_v61, %v2112_v12  ;;  %v2466_v61 = vrot.slane %v2426_v51, %v2818_v1 }
0x1541   :  { %v2119_v57 = vsel %vm737_vm8, %v2113_v25, -inf  ;;  %v2204_v49 = vrot.slane %v2171_v23, %v2818_v1 }
0x1542   :  { %2120 = vmax.xlane.f32.xlu0 %v2119_v57 }
0x1543   :  { %v2233_v18 = vsel %vm184_vm3, %v2208_v52, %v2204_v49  ;;  %v2537_v52 = vpop.xlane.xlu0 %2536 }
0x1544   :  { %v2183_v53 = vpop.xlane.xlu1 %2182 }
0x1545   :  { %v2220_v8 = vrot.slane %v2183_v53, %v2818_v1 }
0x1547   :  { %v2236_v14 = vsel %vm184_vm3, %v2224_v26, %v2220_v8 }
0x1548   :  { %v2177_v58 = vpop.xlane.xlu1 %2176  ;;  %v2237_v17 = vsel %vm186_vm4, %v2228_v21, %v2236_v14 }
0x1549   :  { %v2212_v45 = vrot.slane %v2177_v58, %v2818_v1  ;;  %v2238_v39 = vsel %vm188_vm5, %v2232_v46, %v2237_v17  ;;  %v2540_v58 = vpop.xlane.xlu0 %2539  ;;  %v2575_v46 = vrot.slane %v2537_v52, %v2818_v1 }
0x154a   :  { %v2244_v29 = vsel %vm737_vm8, %v2238_v39, -inf }
0x154b   :  { %v2234_v10 = vsel %vm186_vm4, %v2212_v45, %v2233_v18 }
0x154c   :  { %v2180_v42 = vpop.xlane.xlu1 %2179 }
0x154d   :  { %v2216_v30 = vrot.slane %v2180_v42, %v2818_v1  ;;  %v2543_v17 = vpop.xlane.xlu0 %2542 }
0x154f   :  { %v2235_v31 = vsel %vm188_vm5, %v2216_v30, %v2234_v10  ;;  %v2579_v10 = vrot.slane %v2540_v58, %v2818_v1 }
0x1550   :  { %v2288_v34 = vpop.xlane.xlu1 %2287  ;;  %v2241_v41 = vsel %vm737_vm8, %v2235_v31, -inf }
0x1551   :  { %2242 = vmax.xlane.f32.xlu0 %v2241_v41  ;;  %v2321_v59 = vrot.slane %v2288_v34, %v2818_v1  ;;  %v2583_v34 = vrot.slane %v2543_v17, %v2818_v1 }
0x1553   :  { %v2350_v47 = vsel %vm184_vm3, %v2325_v54, %v2321_v59 }
0x1554   :  { %v2300_v24 = vpop.xlane.xlu1 %2299 }
0x1555   :  { %v2337_v13 = vrot.slane %v2300_v24, %v2818_v1  ;;  %2245 = vmax.xlane.f32.xlu0 %v2244_v29 }
0x1557   :  { %v2353_v9 = vsel %vm184_vm3, %v2341_v63, %v2337_v13 }
0x1558   :  { %v2294_v0 = vpop.xlane.xlu1 %2293  ;;  %v2354_v33 = vsel %vm186_vm4, %v2345_v7, %v2353_v9 }
0x1559   :  { %v2329_v4 = vrot.slane %v2294_v0, %v2818_v1  ;;  %v2355_v28 = vsel %vm188_vm5, %v2349_v60, %v2354_v33 }
0x155a   :  { %v2361_v50 = vsel %vm737_vm8, %v2355_v28, -inf }
0x155b   :  { %v2351_v15 = vsel %vm186_vm4, %v2329_v4, %v2350_v47 }
0x155c   :  { %v2297_v35 = vpop.xlane.xlu1 %2296 }
0x155d   :  { %v2333_v48 = vrot.slane %v2297_v35, %v2818_v1 }
0x155f   :  { %v2352_v37 = vsel %vm188_vm5, %v2333_v48, %v2351_v15 }
0x1560   :  { %v2405_v40 = vpop.xlane.xlu1 %2404  ;;  %v2358_v6 = vsel %vm737_vm8, %v2352_v37, -inf }
0x1561   :  { %2359 = vmax.xlane.f32.xlu0 %v2358_v6  ;;  %v2438_v22 = vrot.slane %v2405_v40, %v2818_v1 }
0x1563   :  { %v2467_v12 = vsel %vm184_vm3, %v2442_v3, %v2438_v22 }
0x1564   :  { %v2417_v55 = vpop.xlane.xlu1 %2416 }
0x1565   :  { %v2454_v38 = vrot.slane %v2417_v55, %v2818_v1  ;;  %2362 = vmax.xlane.f32.xlu0 %v2361_v50 }
0x1567   :  { %v2470_v19 = vsel %vm184_vm3, %v2458_v62, %v2454_v38 }
0x1568   :  { %v2411_v32 = vpop.xlane.xlu1 %2410  ;;  %v2471_v2 = vsel %vm186_vm4, %v2462_v56, %v2470_v19 }
0x1569   :  { %v2446_v23 = vrot.slane %v2411_v32, %v2818_v1  ;;  %v2472_v25 = vsel %vm188_vm5, %v2466_v61, %v2471_v2 }
0x156a   :  { %v2478_v57 = vsel %vm737_vm8, %v2472_v25, -inf }
0x156b   :  { %2479 = vmax.xlane.f32.xlu0 %v2478_v57  ;;  %v2468_v43 = vsel %vm186_vm4, %v2446_v23, %v2467_v12 }
0x156c   :  { %v2414_v53 = vpop.xlane.xlu1 %2413 }
0x156d   :  { %v2450_v26 = vrot.slane %v2414_v53, %v2818_v1 }
0x156f   :  { %v2469_v49 = vsel %vm188_vm5, %v2450_v26, %v2468_v43 }
0x1570   :  { %v2522_v8 = vpop.xlane.xlu1 %2521  ;;  %v2475_v21 = vsel %vm737_vm8, %v2469_v49, -inf }
0x1571   :  { %2476 = vmax.xlane.f32.xlu1 %v2475_v21  ;;  %v2555_v14 = vrot.slane %v2522_v8, %v2818_v1 }
0x1573   :  { %v2584_v30 = vsel %vm184_vm3, %v2559_v16, %v2555_v14 }
0x1574   :  { %v2534_v18 = vpop.xlane.xlu1 %2533 }
0x1575   :  { %v2571_v45 = vrot.slane %v2534_v18, %v2818_v1 }
0x1577   :  { %v2587_v39 = vsel %vm184_vm3, %v2575_v46, %v2571_v45 }
0x1578   :  { %v2528_v42 = vpop.xlane.xlu1 %2527  ;;  %v2588_v29 = vsel %vm186_vm4, %v2579_v10, %v2587_v39 }
0x1579   :  { %v2563_v31 = vrot.slane %v2528_v42, %v2818_v1  ;;  %v2589_v63 = vsel %vm188_vm5, %v2583_v34, %v2588_v29 }
0x157a   :  { %v2595_v13 = vsel %vm737_vm8, %v2589_v63, -inf }
0x157b   :  { %v2585_v5 = vsel %vm186_vm4, %v2563_v31, %v2584_v30 }
0x157c   :  { %v2531_v41 = vpop.xlane.xlu1 %2530 }
0x157d   :  { %v2567_v24 = vrot.slane %v2531_v41, %v2818_v1 }
0x157f   :  { %v2586_v54 = vsel %vm188_vm5, %v2567_v24, %v2585_v5 }
0x1580   :  { %v2592_v59 = vsel %vm737_vm8, %v2586_v54, -inf }
0x1581   :  { %2593 = vmax.xlane.f32.xlu0 %v2592_v59 }
0x1585   :  { %2596 = vmax.xlane.f32.xlu0 %v2595_v13 }
0x15c3   :  { %v2118_v27 = vpop.xlane.xlu1 %2117 }
0x15c4   :  { %v2122_v7 = vand.u32 2147483647, %v2118_v27  ;;  %v2152_v9 = vrot.slane %v2118_v27, %v2818_v1 }
0x15c6   :  { %v2124_v0 = vmul.f32 %v2122_v7, %v2840_v36 }
0x15c8   :  { %2129 = vperm.xlu1 %2660, %v2124_v0  }
0x15cb   :  { %v2121_v47 = vpop.xlane.xlu0 %2120 }
0x15cc   :  { %v2123_v4 = vand.u32 2147483647, %v2121_v47  ;;  %v2156_v60 = vrot.slane %v2121_v47, %v2818_v1 }
0x15ce   :  { %v2125_v35 = vmul.f32 %v2123_v4, %v2840_v36  ;;  %v3815_v15 = vsel %vm184_vm3, %v2156_v60, %v2152_v9 }
0x15d0   :  { %2132 = vperm.xlu0 %2659, %v2125_v35  }
0x15da   :  { %v2243_v20 = vpop.xlane.xlu0 %2242 }
0x15db   :  { %v2247_v33 = vand.u32 2147483647, %v2243_v20  ;;  %v2277_v37 = vrot.slane %v2243_v20, %v2818_v1 }
0x15dd   :  { %v2249_v48 = vmul.f32 %v2247_v33, %v2840_v36 }
0x15de   :  { %v2246_v28 = vpop.xlane.xlu0 %2245 }
0x15df   :  { %v2248_v40 = vand.u32 2147483647, %v2246_v28  ;;  %v2281_v6 = vrot.slane %v2246_v28, %v2818_v1  ;;  %2254 = vperm.xlu1 %2660, %v2249_v48  }
0x15e1   :  { %v2250_v50 = vmul.f32 %v2248_v40, %v2840_v36  ;;  %v3822_v51 = vsel %vm184_vm3, %v2281_v6, %v2277_v37 }
0x15e3   :  { %2257 = vperm.xlu1 %2660, %v2250_v50  }
0x15ea   :  { %v2360_v62 = vpop.xlane.xlu0 %2359 }
0x15eb   :  { %v2364_v56 = vand.u32 2147483647, %v2360_v62  ;;  %v2394_v3 = vrot.slane %v2360_v62, %v2818_v1 }
0x15ed   :  { %v2366_v55 = vmul.f32 %v2364_v56, %v2840_v36 }
0x15ee   :  { %v2363_v22 = vpop.xlane.xlu0 %2362 }
0x15ef   :  { %v2365_v38 = vand.u32 2147483647, %v2363_v22  ;;  %v2398_v61 = vrot.slane %v2363_v22, %v2818_v1  ;;  %2371 = vperm.xlu1 %2660, %v2366_v55  }
0x15f1   :  { %v2367_v11 = vmul.f32 %v2365_v38, %v2840_v36  ;;  %v3829_v19 = vsel %vm184_vm3, %v2398_v61, %v2394_v3 }
0x15f3   :  { %2374 = vperm.xlu1 %2660, %v2367_v11  }
0x15f4   :  { %v3835_v23 = vpop.xlane.xlu0 %2479 }
0x15f5   :  { %v2482_v31 = vand.u32 2147483647, %v3835_v23  ;;  %v2515_v56 = vrot.slane %v3835_v23, %v2818_v1 }
0x15f7   :  { %v2484_v41 = vmul.f32 %v2482_v31, %v2840_v36 }
0x15fa   :  { %v3831_v32 = vpop.xlane.xlu1 %2476 }
0x15fb   :  { %v2481_v2 = vand.u32 2147483647, %v3831_v32  ;;  %v2511_v55 = vrot.slane %v3831_v32, %v2818_v1 }
0x15fd   :  { %v2483_v12 = vmul.f32 %v2481_v2, %v2840_v36  ;;  %v2516_v3 = vsel %vm184_vm3, %v2515_v56, %v2511_v55 }
0x15ff   :  { %2488 = vperm.xlu1 %2660, %v2483_v12  }
0x160a   :  { %v2594_v25 = vpop.xlane.xlu0 %2593 }
0x160b   :  { %v2598_v57 = vand.u32 2147483647, %v2594_v25  ;;  %v2628_v43 = vrot.slane %v2594_v25, %v2818_v1 }
0x160d   :  { %v2600_v53 = vmul.f32 %v2598_v57, %v2840_v36 }
0x160e   :  { %v2597_v52 = vpop.xlane.xlu0 %2596 }
0x160f   :  { %v2599_v26 = vand.u32 2147483647, %v2597_v52  ;;  %v2632_v49 = vrot.slane %v2597_v52, %v2818_v1  ;;  %2605 = vperm.xlu1 %2660, %v2600_v53  }
0x1611   :  { %v2601_v8 = vmul.f32 %v2599_v26, %v2840_v36  ;;  %v2633_v21 = vsel %vm184_vm3, %v2632_v49, %v2628_v43 }
0x1613   :  { %2608 = vperm.xlu1 %2660, %v2601_v8  }
0x1643   :  { %v2130_v58 = vpop.permute.xlu1 %2129 }
0x1644   :  { %v2137_v14 = vrot.slane %v2130_v58, %v2818_v1 }
0x164b   :  { %v2133_v18 = vpop.permute.xlu0 %2132 }
0x164c   :  { %v2141_v45 = vrot.slane %v2133_v18, %v2818_v1 }
0x164e   :  { %v2142_v16 = vsel %vm184_vm3, %v2141_v45, %v2137_v14 }
0x164f   :  { %v2144_v46 = vsel %vm233_vm10, %v2142_v16, 0.0 }
0x1650   :  { %2145 = vadd.xlane.f32.xlu0 %v2144_v46 }
0x165a   :  { %v2255_v42 = vpop.permute.xlu1 %2254 }
0x165b   :  { %v2262_v17 = vrot.slane %v2255_v42, %v2818_v1 }
0x165e   :  { %v2258_v10 = vpop.permute.xlu1 %2257 }
0x165f   :  { %v2266_v30 = vrot.slane %v2258_v10, %v2818_v1 }
0x1661   :  { %v2267_v39 = vsel %vm184_vm3, %v2266_v30, %v2262_v17 }
0x1662   :  { %v2269_v34 = vsel %vm233_vm10, %v2267_v39, 0.0 }
0x1663   :  { %2270 = vadd.xlane.f32.xlu1 %v2269_v34 }
0x1666   :  { %2491 = vperm.xlu0 %2659, %v2484_v41  }
0x166a   :  { %v2372_v5 = vpop.permute.xlu1 %2371 }
0x166b   :  { %v2379_v54 = vrot.slane %v2372_v5, %v2818_v1 }
0x166e   :  { %v2375_v29 = vpop.permute.xlu1 %2374 }
0x166f   :  { %v2383_v24 = vrot.slane %v2375_v29, %v2818_v1 }
0x1671   :  { %v2384_v63 = vsel %vm184_vm3, %v2383_v24, %v2379_v54 }
0x1672   :  { %v2386_v59 = vsel %vm233_vm10, %v2384_v63, 0.0 }
0x167a   :  { %v2489_v13 = vpop.permute.xlu1 %2488 }
0x167b   :  { %v2496_v4 = vrot.slane %v2489_v13, %v2818_v1 }
0x1685   :  { %2387 = vadd.xlane.f32.xlu0 %v2386_v59 }
0x168a   :  { %v2606_v27 = vpop.permute.xlu1 %2605 }
0x168b   :  { %v2613_v20 = vrot.slane %v2606_v27, %v2818_v1 }
0x168e   :  { %v2609_v36 = vpop.permute.xlu1 %2608 }
0x168f   :  { %v2617_v60 = vrot.slane %v2609_v36, %v2818_v1 }
0x1691   :  { %v2618_v37 = vsel %vm184_vm3, %v2617_v60, %v2613_v20 }
0x16d9   :  { %v2146_v7 = vpop.xlane.xlu0 %2145 }
0x16da   :  { %v2159_v0 = vmul.f32 %v3815_v15, %v2146_v7  ;;  %v2620_v15 = vsel %vm233_vm10, %v2618_v37, 0.0 }
0x16dc   :  { %v2160_v47 = vadd.f32 %v2159_v0, %v3730_v44 }
0x16e1   :  { %v2492_v9 = vpop.permute.xlu0 %2491 }
0x16e2   :  { %v2500_v35 = vrot.slane %v2492_v9, %v2818_v1 }
0x16e4   :  { %v2501_v33 = vsel %vm184_vm3, %v2500_v35, %v2496_v4 }
0x16e5   :  { %v2503_v48 = vsel %vm233_vm10, %v2501_v33, 0.0 }
0x16e6   :  { %2504 = vadd.xlane.f32.xlu1 %v2503_v48 }
0x16ea   :  { %2621 = vadd.xlane.f32.xlu1 %v2620_v15 }
0x16ec   :  { %v2271_v44 = vpop.xlane.xlu1 %2270 }
0x16ed   :  { %v2284_v28 = vmul.f32 %v3822_v51, %v2271_v44 }
0x16ef   :  { %v2285_v40 = vadd.f32 %v2284_v28, %v2160_v47 }
0x170e   :  { %v2388_v6 = vpop.xlane.xlu0 %2387 }
0x170f   :  { %v2401_v50 = vmul.f32 %v3829_v19, %v2388_v6 }
0x1711   :  { %v2402_v62 = vadd.f32 %v2401_v50, %v2285_v40 }
0x176f   :  { %v2505_v22 = vpop.xlane.xlu1 %2504 }
0x1770   :  { %v2518_v38 = vmul.f32 %v2516_v3, %v2505_v22 }
0x1772   :  { %v2519_v61 = vadd.f32 %v2518_v38, %v2402_v62 }
0x1773   :  { %v2622_v11 = vpop.xlane.xlu1 %2621 }
0x1774   :  { %v2635_v51 = vmul.f32 %v2633_v21, %v2622_v11 }
0x1776   :  { %v2636_v2 = vadd.f32 %v2635_v51, %v2519_v61 }
0x1778   :  { %2637 = vst.msk [vmem:[#allocation5] sm:$0x3] %vm233_vm10, %v2636_v2 }
0x1779   :  { %2692 = shalt.err (!%p2689_p9)
}
0x177a   :  { %2647 = dma.vmem_to_hbm [thread:$0]  %s2645_s17, 32, %s3879_s2, [#allocation4]  }
0x177b   :  { %2703 = dma.done.wait [#allocation4], 32  }
0x177c   :  { %2704 = vsyncadd [#allocation4], 4294967264 }
0x177d   :  { %2651 = vsyncpa [#allocation3], 1 }
0x177e   :  { %2652 = vsyncpa [#allocation4], 1 }

</bundles_post_ra>
